<compile_context>
chip_gen: v6e
topology: v6e:2x2x1
jax: 0.10.0
libtpu: 0.0.40
codegen_flags: <defaults>
</compile_context>

<pallas_src>
import functools
import math

import jax
import jax.numpy as jnp
from jax import lax
from jax.experimental import pallas as pl
from jax.experimental.pallas import tpu as pltpu


# ---------------------------------------------------------------------------
# Synthetic config (mirrors the arguments of StereoMatchingNetwork.__init__)
# ---------------------------------------------------------------------------
NETWORK_CFG = dict(
    max_disp=12,            # max_disp // 3 = 4 candidates at feature scale
    in_channels=8,
    num_downsample=2,
    no_mdconv=True,
    feature_similarity="correlation",
    num_scales=1,
    num_fusions=1,
    deformable_groups=1,
    mdconv_dilation=1,
    no_intermediate_supervision=True,
    num_stage_blocks=1,
    num_deform_blocks=1,
    refine_channels=None,   # -> defaults to in_channels
    isInputFeature=True,    # -> feature_extractor is None
    is_freeze=True,         # -> no loss computation
)

MAX_DISP = NETWORK_CFG["max_disp"] // 3
IN_CH = NETWORK_CFG["in_channels"]
NUM_DOWNSAMPLE = NETWORK_CFG["num_downsample"]
REFINE_CH = IN_CH if NETWORK_CFG["refine_channels"] is None else NETWORK_CFG["refine_channels"]
AGG_HIDDEN = 16


# ---------------------------------------------------------------------------
# VMEM budgeting / tiling plan
# ---------------------------------------------------------------------------
def _vmem_budget():
    """(tile budget bytes, vmem_limit_bytes) per generation.  Conservative when the
    device kind is unknown (works on v7x's 64 MiB VMEM)."""
    try:
        kind = jax.devices()[0].device_kind.lower()
    except Exception:
        kind = ""
    if ("v7" in kind) or ("7x" in kind):
        return 16 << 20, 44 << 20          # 64 MiB physical
    if any(s in kind for s in ("v4", "v5", "v6")):
        return 40 << 20, 100 << 20         # 128 MiB physical
    return 16 << 20, 44 << 20              # unknown: v7x-safe


def _plan_flat_tiling(h, w, per_px_bytes, budget_bytes):
    """Pick (w_pad, t_pix) for the lane-dense flattened-pixel tiling.

    Invariants (the kernels rely on them):
      * t_pix % 128 == 0  -> all rolls / lane slices / stores are 128-aligned,
      * t_pix % w_pad == 0 -> every tile starts at an image-row boundary, so the
        in-kernel column index is simply (lane_index % w_pad).
    The per-step VMEM footprint ~ t_pix * per_px_bytes stays within budget_bytes
    (soft; the raised vmem_limit_bytes gives >2x headroom).
    """
    max_px = max(budget_bytes // max(per_px_bytes, 1), 4096)
    if h * w <= max_px:
        # Whole image in one tile: pad W minimally so H*W_pad is a multiple of 128.
        step = 128 // math.gcd(h, 128)
        w_pad = ((w + step - 1) // step) * step
        return w_pad, h * w_pad
    # Multi-tile: pad W minimally so lcm(W_pad, 128) fits the budget, then take the
    # largest multiple of that unit that fits (>= 2 balanced tiles on big images,
    # which also feeds both v7x TensorCores via dimension_semantics=("parallel",)).
    w_pad, unit = None, None
    for cand in range(w, w + 129):
        u = (cand * 128) // math.gcd(cand, 128)
        if u <= max_px:
            w_pad, unit = cand, u
            break
    if w_pad is None:                      # pathological W / tiny budget fallback
        w_pad = ((w + 127) // 128) * 128
        unit = w_pad
    t_pix = max(max_px // unit, 1) * unit
    return w_pad, t_pix


def _pad_width(x, w_pad):
    """Zero-pad the trailing (width) axis to w_pad.  No-op when already aligned."""
    if x.shape[-1] == w_pad:
        return x
    pad = [(0, 0)] * (x.ndim - 1) + [(0, w_pad - x.shape[-1])]
    return jnp.pad(x, pad)


# ---------------------------------------------------------------------------
# Kernel 1 (fused): correlation cost volume + aggregation MLP + soft-argmin
#   l_ref / r_ref : (B, C, tP)  feature tiles (any float dtype), pixels W-aligned
#   w1t (HID, D), b1 (HID, 1), w2t (D, HID), b2 (D, 1) : resident VMEM weights
#   out_ref       : (B, tP)  regressed disparity, f32, lane-dense store
# ---------------------------------------------------------------------------
def _fused_stereo_kernel(l_ref, r_ref, w1t_ref, b1_ref, w2t_ref, b2_ref, out_ref,
                         *, img_w, max_disp):
    batch, chan, t_pix = l_ref.shape
    inv_c = 1.0 / chan

    l = l_ref[...].astype(jnp.float32)
    r = r_ref[...].astype(jnp.float32)
    w1t = w1t_ref[...]
    b1 = b1_ref[...]
    w2t = w2t_ref[...]
    b2 = b2_ref[...]

    n_lanes = batch * t_pix
    # Tiles start at row boundaries and t_pix % img_w == 0, so the local lane index
    # modulo img_w is the image column index (valid for every folded batch chunk).
    col = lax.broadcasted_iota(jnp.int32, (1, n_lanes), 1) % img_w
    d_idx = lax.broadcasted_iota(jnp.int32, (max_disp, 1), 0)
    d_val = d_idx.astype(jnp.float32)

    # --- correlation cost volume, batch folded onto the lane axis -------------
    rows = []
    for d in range(max_disp):                           # D is tiny -> static unroll
        per_b = []
        for b in range(batch):
            rb = r[b] if d == 0 else pltpu.roll(r[b], shift=d, axis=1)
            per_b.append(jnp.sum(l[b] * rb, axis=0, keepdims=True))   # (1, tP)
        rows.append(jnp.concatenate(per_b, axis=1) * inv_c)           # (1, B*tP)
    x = jnp.concatenate(rows, axis=0)                   # (D, B*tP)
    # Mask-after-reduce: one select over the whole cost block zeroes the columns
    # where the rolled right feature wrapped around a row start (col < d).
    x = jnp.where(col >= d_idx, x, 0.0)

    # --- aggregation: residual MLP over the disparity axis (MXU, pixels on N) --
    h = jnp.maximum(jnp.dot(w1t, x, preferred_element_type=jnp.float32) + b1, 0.0)
    agg = jnp.dot(w2t, h, preferred_element_type=jnp.float32) + b2 + x  # (D, B*tP)

    # --- softmax-weighted disparity regression over D -------------------------
    m = jnp.max(agg, axis=0, keepdims=True)
    e = jnp.exp(agg - m)
    s = jnp.sum(e, axis=0, keepdims=True)
    num = jnp.sum(e * d_val, axis=0, keepdims=True)
    disp = num * pl.reciprocal(s, approx=True)          # (1, B*tP), EUP divide

    # Un-fold the batch (cheap sublane pack of aligned lane slices), one store.
    out_ref[...] = jnp.concatenate(
        [disp[:, b * t_pix:(b + 1) * t_pix] for b in range(batch)], axis=0)


def _cost_agg_regression(left_feat, right_feat, w1t, b1c, w2t, b2c):
    B, C, H, W = left_feat.shape
    budget, vmem_limit = _vmem_budget()
    in_bytes = jnp.dtype(left_feat.dtype).itemsize
    # Rough per-pixel live VMEM: double-buffered input tiles + f32 temporaries
    # (casts, rolled copy, cost block, hidden layer, softmax) + output buffers.
    per_px = 4 * B * C * in_bytes + 4 * B * (3 * C + AGG_HIDDEN + 6 * MAX_DISP + 8)
    w_pad, t_pix = _plan_flat_tiling(H, W, per_px, budget)

    hwp = H * w_pad
    lf = _pad_width(left_feat, w_pad).reshape(B, C, hwp)    # free reshapes only
    rf = _pad_width(right_feat, w_pad).reshape(B, C, hwp)
    grid = (pl.cdiv(hwp, t_pix),)

    kernel = functools.partial(_fused_stereo_kernel, img_w=w_pad, max_disp=MAX_DISP)
    out = pl.pallas_call(
        kernel,
        out_shape=jax.ShapeDtypeStruct((B, hwp), jnp.float32),
        grid=grid,
        in_specs=[
            pl.BlockSpec((B, C, t_pix), lambda t: (0, 0, t)),
            pl.BlockSpec((B, C, t_pix), lambda t: (0, 0, t)),
            # Tiny aggregation weights: full-array blocks with a constant index map
            # -> DMA'd once and kept resident in VMEM across all grid steps.
            pl.BlockSpec((AGG_HIDDEN, MAX_DISP), lambda t: (0, 0)),
            pl.BlockSpec((AGG_HIDDEN, 1), lambda t: (0, 0)),
            pl.BlockSpec((MAX_DISP, AGG_HIDDEN), lambda t: (0, 0)),
            pl.BlockSpec((MAX_DISP, 1), lambda t: (0, 0)),
        ],
        out_specs=pl.BlockSpec((B, t_pix), lambda t: (0, t)),
        compiler_params=pltpu.CompilerParams(
            dimension_semantics=("parallel",),
            vmem_limit_bytes=vmem_limit),
    )(lf, rf, w1t, b1c, w2t, b2c)
    return out.reshape(B, H, w_pad)[..., :W]


# ---------------------------------------------------------------------------
# Kernel 2: refinement residual — per-pixel 1x1 conv over [disp, left, right]
# as a full-width VPU weighted channel sum (pixels on lanes, channels on sublanes).
#   out = relu(disp + w0*disp + sum_c wl_c*left_c + sum_c wr_c*right_c + b)
# ---------------------------------------------------------------------------
def _refine_kernel(d_ref, l_ref, r_ref, wl_ref, wr_ref, sc_ref, o_ref):
    d = d_ref[...]                                       # (B, tP) f32
    l = l_ref[...].astype(jnp.float32)                   # (B, C, tP)
    r = r_ref[...].astype(jnp.float32)                   # (B, C, tP)
    acc = d * sc_ref[0] + sc_ref[1]                      # scalar terms from SMEM
    acc = acc + jnp.sum(l * wl_ref[...], axis=1)         # full-sublane multiply,
    acc = acc + jnp.sum(r * wr_ref[...], axis=1)         # then one channel reduce
    o_ref[...] = jnp.maximum(d + acc, 0.0)               # lane-dense (B, tP) store


def _refine_stage(d3, l4, r4, w_vec, b_vec):
    B, C, H, W = l4.shape
    budget, vmem_limit = _vmem_budget()
    in_bytes = jnp.dtype(l4.dtype).itemsize
    per_px = 4 * B * C * in_bytes + 4 * B * (2 * C + 8)
    w_pad, t_pix = _plan_flat_tiling(H, W, per_px, budget)

    hwp = H * w_pad
    d_flat = _pad_width(d3, w_pad).reshape(B, hwp)
    l_flat = _pad_width(l4, w_pad).reshape(B, C, hwp)
    r_flat = _pad_width(r4, w_pad).reshape(B, C, hwp)
    wl = w_vec[1:1 + C].reshape(1, C, 1)                 # per-channel left weights
    wr = w_vec[1 + C:1 + 2 * C].reshape(1, C, 1)         # per-channel right weights
    sc = jnp.concatenate([w_vec[:1], b_vec[:1]])         # [w_disp, bias] -> SMEM
    grid = (pl.cdiv(hwp, t_pix),)

    out = pl.pallas_call(
        _refine_kernel,
        out_shape=jax.ShapeDtypeStruct((B, hwp), jnp.float32),
        grid=grid,
        in_specs=[
            pl.BlockSpec((B, t_pix), lambda t: (0, t)),
            pl.BlockSpec((B, C, t_pix), lambda t: (0, 0, t)),
            pl.BlockSpec((B, C, t_pix), lambda t: (0, 0, t)),
            pl.BlockSpec((1, C, 1), lambda t: (0, 0, 0)),            # resident VMEM
            pl.BlockSpec((1, C, 1), lambda t: (0, 0, 0)),            # resident VMEM
            pl.BlockSpec(memory_space=pltpu.MemorySpace.SMEM),       # (2,) scalars
        ],
        out_specs=pl.BlockSpec((B, t_pix), lambda t: (0, t)),
        compiler_params=pltpu.CompilerParams(
            dimension_semantics=("parallel",),
            vmem_limit_bytes=vmem_limit),
    )(d_flat, l_flat, r_flat, wl, wr, sc)
    return out.reshape(B, H, w_pad)[..., :W]


# ---------------------------------------------------------------------------
# Parameters (deterministic, in-script) — same layout/values as reference impl
# ---------------------------------------------------------------------------
def init_params(key):
    k1, k2, k3 = jax.random.split(key, 3)
    params = {
        "agg_w1": jax.random.normal(k1, (MAX_DISP, AGG_HIDDEN), jnp.float32) * 0.1,
        "agg_b1": jnp.zeros((1, AGG_HIDDEN), jnp.float32),
        "agg_w2": jax.random.normal(k2, (AGG_HIDDEN, MAX_DISP), jnp.float32) * 0.1,
        "agg_b2": jnp.zeros((1, MAX_DISP), jnp.float32),
    }
    refine = []
    cin = 1 + 2 * REFINE_CH
    for kr in jax.random.split(k3, NUM_DOWNSAMPLE):
        refine.append(
            (jax.random.normal(kr, (cin, 1), jnp.float32) * 0.01,
             jnp.zeros((1, 1), jnp.float32)))
    params["refine"] = refine
    return params


# ---------------------------------------------------------------------------
# Forward pass (mirrors StereoMatchingNetwork.predict / forward)
# ---------------------------------------------------------------------------
def disparity_refinement(left_feat, right_feat, disparity, refine_params):
    """Mirrors StereoMatchingNetwork.disparity_refinement (num_downsample stages)."""
    B, C, H, W = left_feat.shape
    pyramid = []
    for i in range(NUM_DOWNSAMPLE):
        scale = 1.0 / (2 ** (NUM_DOWNSAMPLE - i - 1))
        if scale == 1.0:
            cl, cr, h, w = left_feat, right_feat, H, W
        else:
            h, w = int(round(H * scale)), int(round(W * scale))
            cl = jax.image.resize(left_feat, (B, C, h, w), method="bilinear")
            cr = jax.image.resize(right_feat, (B, C, h, w), method="bilinear")
        # Resize disparity to this resolution; rescale values with the width ratio.
        d_cur = jax.image.resize(disparity, (B, h, w), method="bilinear") * (
            w / disparity.shape[-1])
        w_r, b_r = refine_params[i]
        disparity = _refine_stage(d_cur, cl, cr, w_r.reshape(-1), b_r.reshape(-1))
        pyramid.append(disparity)
    return pyramid


def predict(left_img, right_img, params, feature_dtype=jnp.bfloat16):
    # isInputFeature=True -> feature_extractor is None; features are the inputs.
    # Cast the feature slabs once (default bf16: halves the dominant HBM read on
    # v6e/v7x); every kernel accumulates in f32 and all disparities stay f32.
    left_feat = left_img.astype(feature_dtype)
    right_feat = right_img.astype(feature_dtype)

    # Kernel-friendly (transposed) views of the tiny aggregation weights.
    w1t = params["agg_w1"].T                # (HID, D)
    b1c = params["agg_b1"].T                # (HID, 1)
    w2t = params["agg_w2"].T                # (D, HID)
    b2c = params["agg_b2"].T                # (D, 1)

    # Fused: cost volume -> aggregation -> disparity regression (single pallas_call).
    disp = _cost_agg_regression(left_feat, right_feat, w1t, b1c, w2t, b2c)

    disparity_pyramid = [disp]
    disparity_pyramid += disparity_refinement(left_feat, right_feat, disp,
                                              params["refine"])
    return disparity_pyramid


def forward(left_img, right_img, params, labels=None):
    preds = predict(left_img, right_img, params)
    losses = None          # is_freeze=True -> loss never computed
    artifacts = None
    return preds, losses, artifacts


# ---------------------------------------------------------------------------
if __name__ == "__main__":
    key = jax.random.PRNGKey(0)
    k_left, k_right, k_params, k_left2, k_right2 = jax.random.split(key, 5)
    params = init_params(k_params)
    fwd = jax.jit(functools.partial(forward, params=params))

    # Case 1: W a multiple of the alignment unit (no padding path).
    B, C, H, W = 2, IN_CH, 16, 32
    left_img = jax.random.normal(k_left, (B, C, H, W), jnp.float32)
    right_img = jax.random.normal(k_right, (B, C, H, W), jnp.float32)
    preds, losses, artifacts = fwd(left_img, right_img)
    jax.block_until_ready(preds)
    expected = [(B, H, W), (B, H // 2, W // 2), (B, H, W)]
    assert [tuple(p.shape) for p in preds] == expected, (
        [tuple(p.shape) for p in preds], expected)
    assert all(bool(jnp.all(jnp.isfinite(p))) for p in preds)

    # Case 2: width NOT 128-friendly (exercises the minimal-width-padding path).
    H2, W2 = 8, 24
    left2 = jax.random.normal(k_left2, (B, C, H2, W2), jnp.float32)
    right2 = jax.random.normal(k_right2, (B, C, H2, W2), jnp.float32)
    preds2, _, _ = jax.jit(functools.partial(forward, params=params))(left2, right2)
    jax.block_until_ready(preds2)
    expected2 = [(B, H2, W2), (B, H2 // 2, W2 // 2), (B, H2, W2)]
    assert [tuple(p.shape) for p in preds2] == expected2, (
        [tuple(p.shape) for p in preds2], expected2)
    assert all(bool(jnp.all(jnp.isfinite(p))) for p in preds2)

    print("KERNEL_OK")
</pallas_src>

<mosaic_0001>
module attributes {stable_mosaic.version = 11 : i64} {
  func.func @_refine_kernel(%arg0: i32, %arg1: memref<2x128xf32, #tpu.memory_space<vmem>>, %arg2: memref<2x8x128xbf16, #tpu.memory_space<vmem>>, %arg3: memref<2x8x128xbf16, #tpu.memory_space<vmem>>, %arg4: memref<1x8x1xf32, #tpu.memory_space<vmem>>, %arg5: memref<1x8x1xf32, #tpu.memory_space<vmem>>, %arg6: memref<2xf32, #tpu.memory_space<smem>>, %arg7: memref<2x128xf32, #tpu.memory_space<vmem>>) attributes {dimension_semantics = [#tpu.dimension_semantics<parallel>], iteration_bounds = array<i64: 1>, scalar_prefetch = 0 : i64, scratch_operands = 0 : i64, tpu.core_type = #tpu.core_type<tc>, window_params = [{transform_indices = @transform_0, window_bounds = array<i64: 2, 128>}, {transform_indices = @transform_1, window_bounds = array<i64: 2, 8, 128>}, {transform_indices = @transform_2, window_bounds = array<i64: 2, 8, 128>}, {pipeline_mode = #tpu.pipeline_mode<synchronous>, transform_indices = @transform_3, window_bounds = array<i64: 1, 8, 1>}, {pipeline_mode = #tpu.pipeline_mode<synchronous>, transform_indices = @transform_4, window_bounds = array<i64: 1, 8, 1>}, {transform_indices = @transform_5, window_bounds = array<i64: 2>}, {transform_indices = @transform_6, window_bounds = array<i64: 2, 128>}]} {
    %c0 = arith.constant 0 : index
    %c0_0 = arith.constant 0 : index
    %0 = vector.load %arg1[%c0, %c0_0] : memref<2x128xf32, #tpu.memory_space<vmem>>, vector<2x128xf32>
    %c0_1 = arith.constant 0 : index
    %c0_2 = arith.constant 0 : index
    %c0_3 = arith.constant 0 : index
    %1 = vector.load %arg2[%c0_1, %c0_2, %c0_3] : memref<2x8x128xbf16, #tpu.memory_space<vmem>>, vector<2x8x128xbf16>
    %2 = arith.extf %1 : vector<2x8x128xbf16> to vector<2x8x128xf32>
    %c0_4 = arith.constant 0 : index
    %c0_5 = arith.constant 0 : index
    %c0_6 = arith.constant 0 : index
    %3 = vector.load %arg3[%c0_4, %c0_5, %c0_6] : memref<2x8x128xbf16, #tpu.memory_space<vmem>>, vector<2x8x128xbf16>
    %4 = arith.extf %3 : vector<2x8x128xbf16> to vector<2x8x128xf32>
    %c0_7 = arith.constant 0 : index
    %5 = memref.load %arg6[%c0_7] : memref<2xf32, #tpu.memory_space<smem>>
    %6 = vector.broadcast %5 : f32 to vector<2x128xf32>
    %7 = arith.mulf %0, %6 : vector<2x128xf32>
    %c1 = arith.constant 1 : index
    %8 = memref.load %arg6[%c1] : memref<2xf32, #tpu.memory_space<smem>>
    %9 = vector.broadcast %8 : f32 to vector<2x128xf32>
    %10 = arith.addf %7, %9 : vector<2x128xf32>
    %c0_8 = arith.constant 0 : index
    %c0_9 = arith.constant 0 : index
    %c0_10 = arith.constant 0 : index
    %11 = vector.load %arg4[%c0_8, %c0_9, %c0_10] : memref<1x8x1xf32, #tpu.memory_space<vmem>>, vector<1x8x1xf32>
    %12 = vector.broadcast %11 : vector<1x8x1xf32> to vector<2x8x128xf32>
    %13 = arith.mulf %2, %12 : vector<2x8x128xf32>
    %cst = arith.constant dense<0.000000e+00> : vector<2x128xf32>
    %14 = vector.multi_reduction <add>, %13, %cst [1] : vector<2x8x128xf32> to vector<2x128xf32>
    %15 = arith.addf %10, %14 : vector<2x128xf32>
    %c0_11 = arith.constant 0 : index
    %c0_12 = arith.constant 0 : index
    %c0_13 = arith.constant 0 : index
    %16 = vector.load %arg5[%c0_11, %c0_12, %c0_13] : memref<1x8x1xf32, #tpu.memory_space<vmem>>, vector<1x8x1xf32>
    %17 = vector.broadcast %16 : vector<1x8x1xf32> to vector<2x8x128xf32>
    %18 = arith.mulf %4, %17 : vector<2x8x128xf32>
    %cst_14 = arith.constant dense<0.000000e+00> : vector<2x128xf32>
    %19 = vector.multi_reduction <add>, %18, %cst_14 [1] : vector<2x8x128xf32> to vector<2x128xf32>
    %20 = arith.addf %15, %19 : vector<2x128xf32>
    %21 = arith.addf %0, %20 : vector<2x128xf32>
    %cst_15 = arith.constant 0.000000e+00 : f32
    %22 = vector.broadcast %cst_15 : f32 to vector<2x128xf32>
    %23 = arith.maximumf %21, %22 : vector<2x128xf32>
    %c0_16 = arith.constant 0 : index
    %c0_17 = arith.constant 0 : index
    %24 = vector.load %arg7[%c0_16, %c0_17] : memref<2x128xf32, #tpu.memory_space<vmem>>, vector<2x128xf32>
    tpu.vector_store %arg7[%c0_16, %c0_17], %23 {strides = array<i32>} : memref<2x128xf32, #tpu.memory_space<vmem>>, vector<2x128xf32>,
    return
  }
  func.func @transform_0(%arg0: i32) -> (i32, i32) {
    %c0_i32 = arith.constant 0 : i32
    %c0_i32_0 = arith.constant 0 : i32
    return %c0_i32, %arg0 : i32, i32
  }
  func.func @transform_1(%arg0: i32) -> (i32, i32, i32) {
    %c0_i32 = arith.constant 0 : i32
    %c0_i32_0 = arith.constant 0 : i32
    %c0_i32_1 = arith.constant 0 : i32
    return %c0_i32, %c0_i32_0, %arg0 : i32, i32, i32
  }
  func.func @transform_2(%arg0: i32) -> (i32, i32, i32) {
    %c0_i32 = arith.constant 0 : i32
    %c0_i32_0 = arith.constant 0 : i32
    %c0_i32_1 = arith.constant 0 : i32
    return %c0_i32, %c0_i32_0, %arg0 : i32, i32, i32
  }
  func.func @transform_3(%arg0: i32) -> (i32, i32, i32) {
    %c0_i32 = arith.constant 0 : i32
    %c0_i32_0 = arith.constant 0 : i32
    %c0_i32_1 = arith.constant 0 : i32
    %c0_i32_2 = arith.constant 0 : i32
    return %c0_i32, %c0_i32_0, %c0_i32_1 : i32, i32, i32
  }
  func.func @transform_4(%arg0: i32) -> (i32, i32, i32) {
    %c0_i32 = arith.constant 0 : i32
    %c0_i32_0 = arith.constant 0 : i32
    %c0_i32_1 = arith.constant 0 : i32
    %c0_i32_2 = arith.constant 0 : i32
    return %c0_i32, %c0_i32_0, %c0_i32_1 : i32, i32, i32
  }
  func.func @transform_5(%arg0: i32) -> i32 {
    %c0_i32 = arith.constant 0 : i32
    %c0_i32_0 = arith.constant 0 : i32
    return %c0_i32 : i32
  }
  func.func @transform_6(%arg0: i32) -> (i32, i32) {
    %c0_i32 = arith.constant 0 : i32
    %c0_i32_0 = arith.constant 0 : i32
    return %c0_i32, %arg0 : i32, i32
  }
}

module attributes {stable_mosaic.version = 11 : i64} {
  func.func @_fused_stereo_kernel(%arg0: i32, %arg1: memref<2x8x512xbf16, #tpu.memory_space<vmem>>, %arg2: memref<2x8x512xbf16, #tpu.memory_space<vmem>>, %arg3: memref<16x4xf32, #tpu.memory_space<vmem>>, %arg4: memref<16x1xf32, #tpu.memory_space<vmem>>, %arg5: memref<4x16xf32, #tpu.memory_space<vmem>>, %arg6: memref<4x1xf32, #tpu.memory_space<vmem>>, %arg7: memref<2x512xf32, #tpu.memory_space<vmem>>) attributes {dimension_semantics = [#tpu.dimension_semantics<parallel>], iteration_bounds = array<i64: 1>, scalar_prefetch = 0 : i64, scratch_operands = 0 : i64, tpu.core_type = #tpu.core_type<tc>, window_params = [{transform_indices = @transform_0, window_bounds = array<i64: 2, 8, 512>}, {transform_indices = @transform_1, window_bounds = array<i64: 2, 8, 512>}, {pipeline_mode = #tpu.pipeline_mode<synchronous>, transform_indices = @transform_2, window_bounds = array<i64: 16, 4>}, {pipeline_mode = #tpu.pipeline_mode<synchronous>, transform_indices = @transform_3, window_bounds = array<i64: 16, 1>}, {pipeline_mode = #tpu.pipeline_mode<synchronous>, transform_indices = @transform_4, window_bounds = array<i64: 4, 16>}, {pipeline_mode = #tpu.pipeline_mode<synchronous>, transform_indices = @transform_5, window_bounds = array<i64: 4, 1>}, {transform_indices = @transform_6, window_bounds = array<i64: 2, 512>}]} {
    %c0 = arith.constant 0 : index
    %c0_0 = arith.constant 0 : index
    %c0_1 = arith.constant 0 : index
    %0 = vector.load %arg1[%c0, %c0_0, %c0_1] : memref<2x8x512xbf16, #tpu.memory_space<vmem>>, vector<2x8x512xbf16>
    %1 = arith.extf %0 : vector<2x8x512xbf16> to vector<2x8x512xf32>
    %c0_2 = arith.constant 0 : index
    %c0_3 = arith.constant 0 : index
    %c0_4 = arith.constant 0 : index
    %2 = vector.load %arg2[%c0_2, %c0_3, %c0_4] : memref<2x8x512xbf16, #tpu.memory_space<vmem>>, vector<2x8x512xbf16>
    %3 = arith.extf %2 : vector<2x8x512xbf16> to vector<2x8x512xf32>
    %c0_5 = arith.constant 0 : index
    %c0_6 = arith.constant 0 : index
    %4 = vector.load %arg3[%c0_5, %c0_6] : memref<16x4xf32, #tpu.memory_space<vmem>>, vector<16x4xf32>
    %c0_7 = arith.constant 0 : index
    %c0_8 = arith.constant 0 : index
    %5 = vector.load %arg4[%c0_7, %c0_8] : memref<16x1xf32, #tpu.memory_space<vmem>>, vector<16x1xf32>
    %c0_9 = arith.constant 0 : index
    %c0_10 = arith.constant 0 : index
    %6 = vector.load %arg5[%c0_9, %c0_10] : memref<4x16xf32, #tpu.memory_space<vmem>>, vector<4x16xf32>
    %c0_11 = arith.constant 0 : index
    %c0_12 = arith.constant 0 : index
    %7 = vector.load %arg6[%c0_11, %c0_12] : memref<4x1xf32, #tpu.memory_space<vmem>>, vector<4x1xf32>
    %8 = tpu.iota {dimensions = array<i32: 1>} : vector<1x1024xi32>
    %c32_i32 = arith.constant 32 : i32
    %c0_i32 = arith.constant 0 : i32
    %9 = arith.cmpi eq, %c32_i32, %c0_i32 : i32
    %c1_i32 = arith.constant 1 : i32
    %10 = arith.select %9, %c1_i32, %c32_i32 : i32
    %11 = vector.broadcast %10 : i32 to vector<1x1024xi32>
    %12 = arith.remsi %8, %11 : vector<1x1024xi32>
    %c0_i32_13 = arith.constant 0 : i32
    %13 = vector.broadcast %c0_i32_13 : i32 to vector<1x1024xi32>
    %14 = arith.cmpi ne, %12, %13 : vector<1x1024xi32>
    %c0_i32_14 = arith.constant 0 : i32
    %15 = vector.broadcast %c0_i32_14 : i32 to vector<1x1024xi32>
    %16 = arith.cmpi slt, %12, %15 : vector<1x1024xi32>
    %c0_i32_15 = arith.constant 0 : i32
    %17 = arith.cmpi slt, %10, %c0_i32_15 : i32
    %18 = vector.broadcast %17 : i1 to vector<1x1024xi1>
    %19 = vector.broadcast %18 : vector<1x1024xi1> to vector<1x1024xi1>
    %20 = arith.xori %16, %19 : vector<1x1024xi1>
    %21 = arith.andi %20, %14 : vector<1x1024xi1>
    %22 = vector.broadcast %10 : i32 to vector<1x1024xi32>
    %23 = arith.addi %12, %22 : vector<1x1024xi32>
    %24 = arith.select %21, %23, %12 : vector<1x1024xi1>, vector<1x1024xi32>
    %25 = tpu.iota {dimensions = array<i32: 0>} : vector<4x1xi32>
    %26 = arith.sitofp %25 : vector<4x1xi32> to vector<4x1xf32>
    %27 = vector.extract_strided_slice %3 {offsets = [0, 0, 0], sizes = [1, 8, 512], strides = [1, 1, 1]} : vector<2x8x512xf32> to vector<1x8x512xf32>
    %28 = vector.shape_cast %27 : vector<1x8x512xf32> to vector<8x512xf32>
    %29 = vector.extract_strided_slice %1 {offsets = [0, 0, 0], sizes = [1, 8, 512], strides = [1, 1, 1]} : vector<2x8x512xf32> to vector<1x8x512xf32>
    %30 = vector.shape_cast %29 : vector<1x8x512xf32> to vector<8x512xf32>
    %31 = arith.mulf %30, %28 : vector<8x512xf32>
    %cst = arith.constant dense<0.000000e+00> : vector<512xf32>
    %32 = vector.multi_reduction <add>, %31, %cst [0] : vector<8x512xf32> to vector<512xf32>
    %33 = vector.shape_cast %32 : vector<512xf32> to vector<1x512xf32>
    %34 = vector.extract_strided_slice %3 {offsets = [1, 0, 0], sizes = [1, 8, 512], strides = [1, 1, 1]} : vector<2x8x512xf32> to vector<1x8x512xf32>
    %35 = vector.shape_cast %34 : vector<1x8x512xf32> to vector<8x512xf32>
    %36 = vector.extract_strided_slice %1 {offsets = [1, 0, 0], sizes = [1, 8, 512], strides = [1, 1, 1]} : vector<2x8x512xf32> to vector<1x8x512xf32>
    %37 = vector.shape_cast %36 : vector<1x8x512xf32> to vector<8x512xf32>
    %38 = arith.mulf %37, %35 : vector<8x512xf32>
    %cst_16 = arith.constant dense<0.000000e+00> : vector<512xf32>
    %39 = vector.multi_reduction <add>, %38, %cst_16 [0] : vector<8x512xf32> to vector<512xf32>
    %40 = vector.shape_cast %39 : vector<512xf32> to vector<1x512xf32>
    %41 = tpu.concatenate %33, %40 in 1 : vector<1x512xf32>, vector<1x512xf32> -> vector<1x1024xf32>
    %cst_17 = arith.constant 1.250000e-01 : f32
    %42 = vector.broadcast %cst_17 : f32 to vector<1x1024xf32>
    %43 = arith.mulf %41, %42 : vector<1x1024xf32>
    %44 = vector.extract_strided_slice %3 {offsets = [0, 0, 0], sizes = [1, 8, 512], strides = [1, 1, 1]} : vector<2x8x512xf32> to vector<1x8x512xf32>
    %45 = vector.shape_cast %44 : vector<1x8x512xf32> to vector<8x512xf32>
    %c1_i32_18 = arith.constant 1 : i32
    %46 = tpu.dynamic_rotate %45 by %c1_i32_18 dim 1 : vector<8x512xf32>, i32 -> vector<8x512xf32>
    %47 = vector.extract_strided_slice %1 {offsets = [0, 0, 0], sizes = [1, 8, 512], strides = [1, 1, 1]} : vector<2x8x512xf32> to vector<1x8x512xf32>
    %48 = vector.shape_cast %47 : vector<1x8x512xf32> to vector<8x512xf32>
    %49 = arith.mulf %48, %46 : vector<8x512xf32>
    %cst_19 = arith.constant dense<0.000000e+00> : vector<512xf32>
    %50 = vector.multi_reduction <add>, %49, %cst_19 [0] : vector<8x512xf32> to vector<512xf32>
    %51 = vector.shape_cast %50 : vector<512xf32> to vector<1x512xf32>
    %52 = vector.extract_strided_slice %3 {offsets = [1, 0, 0], sizes = [1, 8, 512], strides = [1, 1, 1]} : vector<2x8x512xf32> to vector<1x8x512xf32>
    %53 = vector.shape_cast %52 : vector<1x8x512xf32> to vector<8x512xf32>
    %c1_i32_20 = arith.constant 1 : i32
    %54 = tpu.dynamic_rotate %53 by %c1_i32_20 dim 1 : vector<8x512xf32>, i32 -> vector<8x512xf32>
    %55 = vector.extract_strided_slice %1 {offsets = [1, 0, 0], sizes = [1, 8, 512], strides = [1, 1, 1]} : vector<2x8x512xf32> to vector<1x8x512xf32>
    %56 = vector.shape_cast %55 : vector<1x8x512xf32> to vector<8x512xf32>
    %57 = arith.mulf %56, %54 : vector<8x512xf32>
    %cst_21 = arith.constant dense<0.000000e+00> : vector<512xf32>
    %58 = vector.multi_reduction <add>, %57, %cst_21 [0] : vector<8x512xf32> to vector<512xf32>
    %59 = vector.shape_cast %58 : vector<512xf32> to vector<1x512xf32>
    %60 = tpu.concatenate %51, %59 in 1 : vector<1x512xf32>, vector<1x512xf32> -> vector<1x1024xf32>
    %cst_22 = arith.constant 1.250000e-01 : f32
    %61 = vector.broadcast %cst_22 : f32 to vector<1x1024xf32>
    %62 = arith.mulf %60, %61 : vector<1x1024xf32>
    %63 = vector.extract_strided_slice %3 {offsets = [0, 0, 0], sizes = [1, 8, 512], strides = [1, 1, 1]} : vector<2x8x512xf32> to vector<1x8x512xf32>
    %64 = vector.shape_cast %63 : vector<1x8x512xf32> to vector<8x512xf32>
    %c2_i32 = arith.constant 2 : i32
    %65 = tpu.dynamic_rotate %64 by %c2_i32 dim 1 : vector<8x512xf32>, i32 -> vector<8x512xf32>
    %66 = vector.extract_strided_slice %1 {offsets = [0, 0, 0], sizes = [1, 8, 512], strides = [1, 1, 1]} : vector<2x8x512xf32> to vector<1x8x512xf32>
    %67 = vector.shape_cast %66 : vector<1x8x512xf32> to vector<8x512xf32>
    %68 = arith.mulf %67, %65 : vector<8x512xf32>
    %cst_23 = arith.constant dense<0.000000e+00> : vector<512xf32>
    %69 = vector.multi_reduction <add>, %68, %cst_23 [0] : vector<8x512xf32> to vector<512xf32>
    %70 = vector.shape_cast %69 : vector<512xf32> to vector<1x512xf32>
    %71 = vector.extract_strided_slice %3 {offsets = [1, 0, 0], sizes = [1, 8, 512], strides = [1, 1, 1]} : vector<2x8x512xf32> to vector<1x8x512xf32>
    %72 = vector.shape_cast %71 : vector<1x8x512xf32> to vector<8x512xf32>
    %c2_i32_24 = arith.constant 2 : i32
    %73 = tpu.dynamic_rotate %72 by %c2_i32_24 dim 1 : vector<8x512xf32>, i32 -> vector<8x512xf32>
    %74 = vector.extract_strided_slice %1 {offsets = [1, 0, 0], sizes = [1, 8, 512], strides = [1, 1, 1]} : vector<2x8x512xf32> to vector<1x8x512xf32>
    %75 = vector.shape_cast %74 : vector<1x8x512xf32> to vector<8x512xf32>
    %76 = arith.mulf %75, %73 : vector<8x512xf32>
    %cst_25 = arith.constant dense<0.000000e+00> : vector<512xf32>
    %77 = vector.multi_reduction <add>, %76, %cst_25 [0] : vector<8x512xf32> to vector<512xf32>
    %78 = vector.shape_cast %77 : vector<512xf32> to vector<1x512xf32>
    %79 = tpu.concatenate %70, %78 in 1 : vector<1x512xf32>, vector<1x512xf32> -> vector<1x1024xf32>
    %cst_26 = arith.constant 1.250000e-01 : f32
    %80 = vector.broadcast %cst_26 : f32 to vector<1x1024xf32>
    %81 = arith.mulf %79, %80 : vector<1x1024xf32>
    %82 = vector.extract_strided_slice %3 {offsets = [0, 0, 0], sizes = [1, 8, 512], strides = [1, 1, 1]} : vector<2x8x512xf32> to vector<1x8x512xf32>
    %83 = vector.shape_cast %82 : vector<1x8x512xf32> to vector<8x512xf32>
    %c3_i32 = arith.constant 3 : i32
    %84 = tpu.dynamic_rotate %83 by %c3_i32 dim 1 : vector<8x512xf32>, i32 -> vector<8x512xf32>
    %85 = vector.extract_strided_slice %1 {offsets = [0, 0, 0], sizes = [1, 8, 512], strides = [1, 1, 1]} : vector<2x8x512xf32> to vector<1x8x512xf32>
    %86 = vector.shape_cast %85 : vector<1x8x512xf32> to vector<8x512xf32>
    %87 = arith.mulf %86, %84 : vector<8x512xf32>
    %cst_27 = arith.constant dense<0.000000e+00> : vector<512xf32>
    %88 = vector.multi_reduction <add>, %87, %cst_27 [0] : vector<8x512xf32> to vector<512xf32>
    %89 = vector.shape_cast %88 : vector<512xf32> to vector<1x512xf32>
    %90 = vector.extract_strided_slice %3 {offsets = [1, 0, 0], sizes = [1, 8, 512], strides = [1, 1, 1]} : vector<2x8x512xf32> to vector<1x8x512xf32>
    %91 = vector.shape_cast %90 : vector<1x8x512xf32> to vector<8x512xf32>
    %c3_i32_28 = arith.constant 3 : i32
    %92 = tpu.dynamic_rotate %91 by %c3_i32_28 dim 1 : vector<8x512xf32>, i32 -> vector<8x512xf32>
    %93 = vector.extract_strided_slice %1 {offsets = [1, 0, 0], sizes = [1, 8, 512], strides = [1, 1, 1]} : vector<2x8x512xf32> to vector<1x8x512xf32>
    %94 = vector.shape_cast %93 : vector<1x8x512xf32> to vector<8x512xf32>
    %95 = arith.mulf %94, %92 : vector<8x512xf32>
    %cst_29 = arith.constant dense<0.000000e+00> : vector<512xf32>
    %96 = vector.multi_reduction <add>, %95, %cst_29 [0] : vector<8x512xf32> to vector<512xf32>
    %97 = vector.shape_cast %96 : vector<512xf32> to vector<1x512xf32>
    %98 = tpu.concatenate %89, %97 in 1 : vector<1x512xf32>, vector<1x512xf32> -> vector<1x1024xf32>
    %cst_30 = arith.constant 1.250000e-01 : f32
    %99 = vector.broadcast %cst_30 : f32 to vector<1x1024xf32>
    %100 = arith.mulf %98, %99 : vector<1x1024xf32>
    %101 = tpu.concatenate %43, %62, %81, %100 in 0 : vector<1x1024xf32>, vector<1x1024xf32>, vector<1x1024xf32>, vector<1x1024xf32> -> vector<4x1024xf32>
    %102 = vector.broadcast %24 : vector<1x1024xi32> to vector<4x1024xi32>
    %103 = vector.broadcast %25 : vector<4x1xi32> to vector<4x1024xi32>
    %104 = arith.cmpi sge, %102, %103 : vector<4x1024xi32>
    %cst_31 = arith.constant 0.000000e+00 : f32
    %105 = vector.broadcast %cst_31 : f32 to vector<4x1024xf32>
    %106 = arith.select %104, %101, %105 : vector<4x1024xi1>, vector<4x1024xf32>
    %cst_32 = arith.constant dense<0.000000e+00> : vector<16x1024xf32>
    %107 = tpu.matmul %4, %106, %cst_32 {dimension_numbers = #tpu.dot_dimension_numbers<[1], [0], [0], [1], [0, 0, 1, 1], [], []>} : vector<16x4xf32>, vector<4x1024xf32>, vector<16x1024xf32> -> vector<16x1024xf32>
    %108 = vector.broadcast %5 : vector<16x1xf32> to vector<16x1024xf32>
    %109 = arith.addf %107, %108 : vector<16x1024xf32>
    %cst_33 = arith.constant 0.000000e+00 : f32
    %110 = vector.broadcast %cst_33 : f32 to vector<16x1024xf32>
    %111 = arith.maximumf %109, %110 : vector<16x1024xf32>
    %cst_34 = arith.constant dense<0.000000e+00> : vector<4x1024xf32>
    %112 = tpu.matmul %6, %111, %cst_34 {dimension_numbers = #tpu.dot_dimension_numbers<[1], [0], [0], [1], [0, 0, 1, 1], [], []>} : vector<4x16xf32>, vector<16x1024xf32>, vector<4x1024xf32> -> vector<4x1024xf32>
    %113 = vector.broadcast %7 : vector<4x1xf32> to vector<4x1024xf32>
    %114 = arith.addf %112, %113 : vector<4x1024xf32>
    %115 = arith.addf %114, %106 : vector<4x1024xf32>
    %cst_35 = arith.constant dense<0xFF800000> : vector<1024xf32>
    %116 = vector.multi_reduction <maximumf>, %115, %cst_35 [0] : vector<4x1024xf32> to vector<1024xf32>
    %117 = vector.shape_cast %116 : vector<1024xf32> to vector<1x1024xf32>
    %118 = vector.broadcast %117 : vector<1x1024xf32> to vector<4x1024xf32>
    %119 = arith.subf %115, %118 : vector<4x1024xf32>
    %120 = math.exp %119 : vector<4x1024xf32>
    %cst_36 = arith.constant dense<0.000000e+00> : vector<1024xf32>
    %121 = vector.multi_reduction <add>, %120, %cst_36 [0] : vector<4x1024xf32> to vector<1024xf32>
    %122 = vector.shape_cast %121 : vector<1024xf32> to vector<1x1024xf32>
    %123 = vector.broadcast %26 : vector<4x1xf32> to vector<4x1024xf32>
    %124 = arith.mulf %120, %123 : vector<4x1024xf32>
    %cst_37 = arith.constant dense<0.000000e+00> : vector<1024xf32>
    %125 = vector.multi_reduction <add>, %124, %cst_37 [0] : vector<4x1024xf32> to vector<1024xf32>
    %126 = vector.shape_cast %125 : vector<1024xf32> to vector<1x1024xf32>
    %127 = tpu.reciprocal %122 {approx = true} : vector<1x1024xf32> -> vector<1x1024xf32>
    %128 = arith.mulf %126, %127 : vector<1x1024xf32>
    %129 = vector.extract_strided_slice %128 {offsets = [0, 0], sizes = [1, 512], strides = [1, 1]} : vector<1x1024xf32> to vector<1x512xf32>
    %130 = vector.extract_strided_slice %128 {offsets = [0, 512], sizes = [1, 512], strides = [1, 1]} : vector<1x1024xf32> to vector<1x512xf32>
    %131 = tpu.concatenate %129, %130 in 0 : vector<1x512xf32>, vector<1x512xf32> -> vector<2x512xf32>
    %c0_38 = arith.constant 0 : index
    %c0_39 = arith.constant 0 : index
    %132 = vector.load %arg7[%c0_38, %c0_39] : memref<2x512xf32, #tpu.memory_space<vmem>>, vector<2x512xf32>
    tpu.vector_store %arg7[%c0_38, %c0_39], %131 {strides = array<i32>} : memref<2x512xf32, #tpu.memory_space<vmem>>, vector<2x512xf32>,
    return
  }
  func.func @transform_0(%arg0: i32) -> (i32, i32, i32) {
    %c0_i32 = arith.constant 0 : i32
    %c0_i32_0 = arith.constant 0 : i32
    %c0_i32_1 = arith.constant 0 : i32
    return %c0_i32, %c0_i32_0, %arg0 : i32, i32, i32
  }
  func.func @transform_1(%arg0: i32) -> (i32, i32, i32) {
    %c0_i32 = arith.constant 0 : i32
    %c0_i32_0 = arith.constant 0 : i32
    %c0_i32_1 = arith.constant 0 : i32
    return %c0_i32, %c0_i32_0, %arg0 : i32, i32, i32
  }
  func.func @transform_2(%arg0: i32) -> (i32, i32) {
    %c0_i32 = arith.constant 0 : i32
    %c0_i32_0 = arith.constant 0 : i32
    %c0_i32_1 = arith.constant 0 : i32
    return %c0_i32, %c0_i32_0 : i32, i32
  }
  func.func @transform_3(%arg0: i32) -> (i32, i32) {
    %c0_i32 = arith.constant 0 : i32
    %c0_i32_0 = arith.constant 0 : i32
    %c0_i32_1 = arith.constant 0 : i32
    return %c0_i32, %c0_i32_0 : i32, i32
  }
  func.func @transform_4(%arg0: i32) -> (i32, i32) {
    %c0_i32 = arith.constant 0 : i32
    %c0_i32_0 = arith.constant 0 : i32
    %c0_i32_1 = arith.constant 0 : i32
    return %c0_i32, %c0_i32_0 : i32, i32
  }
  func.func @transform_5(%arg0: i32) -> (i32, i32) {
    %c0_i32 = arith.constant 0 : i32
    %c0_i32_0 = arith.constant 0 : i32
    %c0_i32_1 = arith.constant 0 : i32
    return %c0_i32, %c0_i32_0 : i32, i32
  }
  func.func @transform_6(%arg0: i32) -> (i32, i32) {
    %c0_i32 = arith.constant 0 : i32
    %c0_i32_0 = arith.constant 0 : i32
    return %c0_i32, %arg0 : i32, i32
  }
}

module attributes {stable_mosaic.version = 11 : i64} {
  func.func @_refine_kernel(%arg0: i32, %arg1: memref<2x512xf32, #tpu.memory_space<vmem>>, %arg2: memref<2x8x512xbf16, #tpu.memory_space<vmem>>, %arg3: memref<2x8x512xbf16, #tpu.memory_space<vmem>>, %arg4: memref<1x8x1xf32, #tpu.memory_space<vmem>>, %arg5: memref<1x8x1xf32, #tpu.memory_space<vmem>>, %arg6: memref<2xf32, #tpu.memory_space<smem>>, %arg7: memref<2x512xf32, #tpu.memory_space<vmem>>) attributes {dimension_semantics = [#tpu.dimension_semantics<parallel>], iteration_bounds = array<i64: 1>, scalar_prefetch = 0 : i64, scratch_operands = 0 : i64, tpu.core_type = #tpu.core_type<tc>, window_params = [{transform_indices = @transform_0, window_bounds = array<i64: 2, 512>}, {transform_indices = @transform_1, window_bounds = array<i64: 2, 8, 512>}, {transform_indices = @transform_2, window_bounds = array<i64: 2, 8, 512>}, {pipeline_mode = #tpu.pipeline_mode<synchronous>, transform_indices = @transform_3, window_bounds = array<i64: 1, 8, 1>}, {pipeline_mode = #tpu.pipeline_mode<synchronous>, transform_indices = @transform_4, window_bounds = array<i64: 1, 8, 1>}, {transform_indices = @transform_5, window_bounds = array<i64: 2>}, {transform_indices = @transform_6, window_bounds = array<i64: 2, 512>}]} {
    %c0 = arith.constant 0 : index
    %c0_0 = arith.constant 0 : index
    %0 = vector.load %arg1[%c0, %c0_0] : memref<2x512xf32, #tpu.memory_space<vmem>>, vector<2x512xf32>
    %c0_1 = arith.constant 0 : index
    %c0_2 = arith.constant 0 : index
    %c0_3 = arith.constant 0 : index
    %1 = vector.load %arg2[%c0_1, %c0_2, %c0_3] : memref<2x8x512xbf16, #tpu.memory_space<vmem>>, vector<2x8x512xbf16>
    %2 = arith.extf %1 : vector<2x8x512xbf16> to vector<2x8x512xf32>
    %c0_4 = arith.constant 0 : index
    %c0_5 = arith.constant 0 : index
    %c0_6 = arith.constant 0 : index
    %3 = vector.load %arg3[%c0_4, %c0_5, %c0_6] : memref<2x8x512xbf16, #tpu.memory_space<vmem>>, vector<2x8x512xbf16>
    %4 = arith.extf %3 : vector<2x8x512xbf16> to vector<2x8x512xf32>
    %c0_7 = arith.constant 0 : index
    %5 = memref.load %arg6[%c0_7] : memref<2xf32, #tpu.memory_space<smem>>
    %6 = vector.broadcast %5 : f32 to vector<2x512xf32>
    %7 = arith.mulf %0, %6 : vector<2x512xf32>
    %c1 = arith.constant 1 : index
    %8 = memref.load %arg6[%c1] : memref<2xf32, #tpu.memory_space<smem>>
    %9 = vector.broadcast %8 : f32 to vector<2x512xf32>
    %10 = arith.addf %7, %9 : vector<2x512xf32>
    %c0_8 = arith.constant 0 : index
    %c0_9 = arith.constant 0 : index
    %c0_10 = arith.constant 0 : index
    %11 = vector.load %arg4[%c0_8, %c0_9, %c0_10] : memref<1x8x1xf32, #tpu.memory_space<vmem>>, vector<1x8x1xf32>
    %12 = vector.broadcast %11 : vector<1x8x1xf32> to vector<2x8x512xf32>
    %13 = arith.mulf %2, %12 : vector<2x8x512xf32>
    %cst = arith.constant dense<0.000000e+00> : vector<2x512xf32>
    %14 = vector.multi_reduction <add>, %13, %cst [1] : vector<2x8x512xf32> to vector<2x512xf32>
    %15 = arith.addf %10, %14 : vector<2x512xf32>
    %c0_11 = arith.constant 0 : index
    %c0_12 = arith.constant 0 : index
    %c0_13 = arith.constant 0 : index
    %16 = vector.load %arg5[%c0_11, %c0_12, %c0_13] : memref<1x8x1xf32, #tpu.memory_space<vmem>>, vector<1x8x1xf32>
    %17 = vector.broadcast %16 : vector<1x8x1xf32> to vector<2x8x512xf32>
    %18 = arith.mulf %4, %17 : vector<2x8x512xf32>
    %cst_14 = arith.constant dense<0.000000e+00> : vector<2x512xf32>
    %19 = vector.multi_reduction <add>, %18, %cst_14 [1] : vector<2x8x512xf32> to vector<2x512xf32>
    %20 = arith.addf %15, %19 : vector<2x512xf32>
    %21 = arith.addf %0, %20 : vector<2x512xf32>
    %cst_15 = arith.constant 0.000000e+00 : f32
    %22 = vector.broadcast %cst_15 : f32 to vector<2x512xf32>
    %23 = arith.maximumf %21, %22 : vector<2x512xf32>
    %c0_16 = arith.constant 0 : index
    %c0_17 = arith.constant 0 : index
    %24 = vector.load %arg7[%c0_16, %c0_17] : memref<2x512xf32, #tpu.memory_space<vmem>>, vector<2x512xf32>
    tpu.vector_store %arg7[%c0_16, %c0_17], %23 {strides = array<i32>} : memref<2x512xf32, #tpu.memory_space<vmem>>, vector<2x512xf32>,
    return
  }
  func.func @transform_0(%arg0: i32) -> (i32, i32) {
    %c0_i32 = arith.constant 0 : i32
    %c0_i32_0 = arith.constant 0 : i32
    return %c0_i32, %arg0 : i32, i32
  }
  func.func @transform_1(%arg0: i32) -> (i32, i32, i32) {
    %c0_i32 = arith.constant 0 : i32
    %c0_i32_0 = arith.constant 0 : i32
    %c0_i32_1 = arith.constant 0 : i32
    return %c0_i32, %c0_i32_0, %arg0 : i32, i32, i32
  }
  func.func @transform_2(%arg0: i32) -> (i32, i32, i32) {
    %c0_i32 = arith.constant 0 : i32
    %c0_i32_0 = arith.constant 0 : i32
    %c0_i32_1 = arith.constant 0 : i32
    return %c0_i32, %c0_i32_0, %arg0 : i32, i32, i32
  }
  func.func @transform_3(%arg0: i32) -> (i32, i32, i32) {
    %c0_i32 = arith.constant 0 : i32
    %c0_i32_0 = arith.constant 0 : i32
    %c0_i32_1 = arith.constant 0 : i32
    %c0_i32_2 = arith.constant 0 : i32
    return %c0_i32, %c0_i32_0, %c0_i32_1 : i32, i32, i32
  }
  func.func @transform_4(%arg0: i32) -> (i32, i32, i32) {
    %c0_i32 = arith.constant 0 : i32
    %c0_i32_0 = arith.constant 0 : i32
    %c0_i32_1 = arith.constant 0 : i32
    %c0_i32_2 = arith.constant 0 : i32
    return %c0_i32, %c0_i32_0, %c0_i32_1 : i32, i32, i32
  }
  func.func @transform_5(%arg0: i32) -> i32 {
    %c0_i32 = arith.constant 0 : i32
    %c0_i32_0 = arith.constant 0 : i32
    return %c0_i32 : i32
  }
  func.func @transform_6(%arg0: i32) -> (i32, i32) {
    %c0_i32 = arith.constant 0 : i32
    %c0_i32_0 = arith.constant 0 : i32
    return %c0_i32, %arg0 : i32, i32
  }
}

</mosaic_0001>

<bundles_post_ra>
// kernel: forward.4
= control target key start
LH: loop header
LB: loop body
LE: loop exit
PB: predicated region body
PF: predicated region fallthrough
CT: control target
= control target key end

     0   :  { %11 = vsyncpa [#allocation3], 0  ;;  %s194_s0 = inlined_call_operand.vmem [shape: f32[2,128], index: 0, kind: input, shape index: {}]   ;;  %s195_s1 = inlined_call_operand.vmem [shape: bf16[2,8,128], index: 1, kind: input, shape index: {}]   ;;  %s196_s2 = inlined_call_operand.vmem [shape: bf16[2,8,128], index: 2, kind: input, shape index: {}]   ;;  %s197_s3 = inlined_call_operand.vmem [shape: f32[1,8,1], index: 3, kind: input, shape index: {}]   ;;  %s198_s4 = inlined_call_operand.vmem [shape: f32[1,8,1], index: 4, kind: input, shape index: {}]   ;;  %s199_s5 = inlined_call_operand.vmem [shape: f32[2], index: 5, kind: input, shape index: {}]   ;;  %s200_s6 = inlined_call_operand.vmem [shape: f32[2,128], index: 6, kind: output, shape index: {}]  }
   0x1   :  { %s28_s23 = sshll.u32 %s199_s5, 4  ;;  %s29_s23 = int_to_ptr.vmem [resolvable:$true] %s28_s23 }
   0x2   :  { %s122_s24 = scalar_lea.vmem %s29_s23, 16  ;;  %p127_p1 = scmp.lt.s32.totalorder %s29_s23, %s29_s23 }
   0x3   :  { %p123_p0 = scmp.ne.s32.totalorder %s29_s23, %s122_s24  ;;  %p128_p2 = scmp.lt.s32.totalorder %s122_s24, %s122_s24 }
   0x5   :  { %p129_p3 = por %p128_p2, %p127_p1 }
   0x7   :  { %p130_p4 = pnand %p129_p3, %p123_p0 }
   0x9   :  { %133 = shalt.err (!%p130_p4)
}
   0xa   :  { %s136_s25 = smov [#allocation2]  }
   0xb   :  { %31 = dma.vmem_to_smem %s29_s23, 16, %s136_s25, [#allocation3]  }
   0xc   :  { %134 = dma.done.wait [#allocation3], 16  }
   0xd   :  { %135 = vsyncadd [#allocation3], 4294967280 }
   0xe   :  { %35 = sfence }
   0xf   :  { %v51_v0 = vld [vmem:[%s197_s3] sm:$0xff]  ;;  %v137_v1 = vmov 0   ;;  %s45_s7 = sld [smem:[#allocation2]]  ;;  %vm73_vm0 = vcmask 1041409  }
  0x10   :  { %121 = vset.pattern.permute.xlu0 %v137_v1  ;;  %v77_v2 = vld [vmem:[%s198_s4] sm:$0xff]  ;;  %s110_s3 = sld [smem:[#allocation2 + $0x1]] }
  0x11   :  { %54 = vperm.xlu0 %121, %v51_v0   ;;  %v112_v3 = vld [vmem:[%s195_s1] sm:$0xff]  }
  0x12   :  { %v113_v4 = vunpack.c.l.bf16 %v112_v3  ;;  %v114_v5 = vunpack.c.h.bf16 %v112_v3  ;;  %v116_v6 = vld [vmem:[%s196_s2] sm:$0xff]  }
  0x13   :  { %v117_v10 = vunpack.c.l.bf16 %v116_v6  ;;  %v118_v11 = vunpack.c.h.bf16 %v116_v6  ;;  %v36_v20 = vld [vmem:[%s194_s0] sm:$0x3] }
  0x15   :  { %80 = vperm.xlu0 %121, %v77_v2   ;;  %v46_v19 = vstv %s45_s7 }
  0x16   :  { %v47_v29 = vmul.f32 %v46_v19, %v36_v20  ;;  %v49_v30 = vstv %s110_s3 }
  0x18   :  { %v50_v39 = vadd.f32 %v49_v30, %v47_v29 }
  0x8c   :  { %v55_v7 = vpop.permute.xlu0 %54 }
  0x8d   :  { %v57_v8 = vmul.f32 %v113_v4, %v55_v7  ;;  %v58_v9 = vmul.f32 %v114_v5, %v55_v7 }
  0x8f   :  { %v59_v12 = vrot.slane %v57_v8, 4  ;;  %v65_v13 = vrot.slane %v58_v9, 4 }
  0x90   :  { %v81_v14 = vpop.permute.xlu0 %80 }
  0x91   :  { %v60_v15 = vadd.f32 %v59_v12, %v57_v8  ;;  %v66_v16 = vadd.f32 %v65_v13, %v58_v9  ;;  %v83_v17 = vmul.f32 %v117_v10, %v81_v14  ;;  %v84_v18 = vmul.f32 %v118_v11, %v81_v14 }
  0x93   :  { %v61_v21 = vrot.slane %v60_v15, 2  ;;  %v67_v22 = vrot.slane %v66_v16, 2  ;;  %v85_v23 = vrot.slane %v83_v17, 4  ;;  %v91_v24 = vrot.slane %v84_v18, 4 }
  0x95   :  { %v62_v25 = vadd.f32 %v61_v21, %v60_v15  ;;  %v68_v26 = vadd.f32 %v67_v22, %v66_v16  ;;  %v86_v27 = vadd.f32 %v85_v23, %v83_v17  ;;  %v92_v28 = vadd.f32 %v91_v24, %v84_v18 }
  0x97   :  { %v63_v31 = vrot.slane %v62_v25, 1  ;;  %v69_v32 = vrot.slane %v68_v26, 1  ;;  %v87_v33 = vrot.slane %v86_v27, 2  ;;  %v93_v34 = vrot.slane %v92_v28, 2 }
  0x99   :  { %v64_v35 = vadd.f32 %v63_v31, %v62_v25  ;;  %v70_v36 = vadd.f32 %v69_v32, %v68_v26  ;;  %v88_v37 = vadd.f32 %v87_v33, %v86_v27  ;;  %v94_v38 = vadd.f32 %v93_v34, %v92_v28 }
  0x9b   :  { %v74_v40 = vsel %vm73_vm0, %v70_v36, %v64_v35  ;;  %v89_v41 = vrot.slane %v88_v37, 1  ;;  %v95_v42 = vrot.slane %v94_v38, 1 }
  0x9c   :  { %v76_v45 = vadd.f32 %v74_v40, %v50_v39 }
  0x9d   :  { %v90_v43 = vadd.f32 %v89_v41, %v88_v37  ;;  %v96_v44 = vadd.f32 %v95_v42, %v94_v38 }
  0x9f   :  { %v99_v46 = vsel %vm73_vm0, %v96_v44, %v90_v43 }
  0xa0   :  { %v101_v47 = vadd.f32 %v99_v46, %v76_v45 }
  0xa2   :  { %v102_v48 = vadd.f32 %v101_v47, %v36_v20 }
  0xa4   :  { %v103_v49 = vmax.f32 %v102_v48, 0.0 }
  0xa6   :  { %104 = vst [vmem:[%s200_s6] sm:$0x3] %v103_v49 }
  0xa7   :  { %109 = vsyncpa [#allocation3], 1 }

// kernel: forward.5
= control target key start
LH: loop header
LB: loop body
LE: loop exit
PB: predicated region body
PF: predicated region fallthrough
CT: control target
= control target key end

     0   :  { %11 = vsyncpa [#allocation3], 0  ;;  %s419_s0 = inlined_call_operand.vmem [shape: f32[2,512], index: 0, kind: input, shape index: {}]   ;;  %s420_s1 = inlined_call_operand.vmem [shape: bf16[2,8,512], index: 1, kind: input, shape index: {}]   ;;  %s421_s2 = inlined_call_operand.vmem [shape: bf16[2,8,512], index: 2, kind: input, shape index: {}]   ;;  %s422_s3 = inlined_call_operand.vmem [shape: f32[1,8,1], index: 3, kind: input, shape index: {}]   ;;  %s423_s4 = inlined_call_operand.vmem [shape: f32[1,8,1], index: 4, kind: input, shape index: {}]   ;;  %s424_s5 = inlined_call_operand.vmem [shape: f32[2], index: 5, kind: input, shape index: {}]   ;;  %s425_s6 = inlined_call_operand.vmem [shape: f32[2,512], index: 6, kind: output, shape index: {}]  }
   0x1   :  { %s28_s23 = sshll.u32 %s424_s5, 4  ;;  %s29_s23 = int_to_ptr.vmem [resolvable:$true] %s28_s23 }
   0x2   :  { %s312_s24 = scalar_lea.vmem %s29_s23, 16  ;;  %p317_p1 = scmp.lt.s32.totalorder %s29_s23, %s29_s23 }
   0x3   :  { %p313_p0 = scmp.ne.s32.totalorder %s29_s23, %s312_s24  ;;  %p318_p2 = scmp.lt.s32.totalorder %s312_s24, %s312_s24 }
   0x5   :  { %p319_p3 = por %p318_p2, %p317_p1 }
   0x7   :  { %p320_p4 = pnand %p319_p3, %p313_p0 }
   0x9   :  { %323 = shalt.err (!%p320_p4)
}
   0xa   :  { %s326_s25 = smov [#allocation2]  }
   0xb   :  { %31 = dma.vmem_to_smem %s29_s23, 16, %s326_s25, [#allocation3]  }
   0xc   :  { %324 = dma.done.wait [#allocation3], 16  }
   0xd   :  { %325 = vsyncadd [#allocation3], 4294967280 }
   0xe   :  { %35 = sfence }
   0xf   :  { %v67_v0 = vld [vmem:[%s422_s3] sm:$0xff]  ;;  %v327_v1 = vmov 0   ;;  %v38_v4 = vld [vmem:[%s420_s1 + $0x8] sm:$0xff]  ;;  %v39_v5 = vld [vmem:[%s420_s1 + $0x10] sm:$0xff]  ;;  %v328_v15 = vmov 1983009808   ;;  %v142_v17 = vlaneseq }
  0x10   :  { %311 = vset.pattern.permute.xlu0 %v327_v1  ;;  %v186_v2 = vld [vmem:[%s423_s4] sm:$0xff]  ;;  %v40_v6 = vld [vmem:[%s420_s1 + $0x18] sm:$0xff]  ;;  %v43_v9 = vunpack.c.l.bf16 %v38_v4  ;;  %v44_v10 = vunpack.c.h.bf16 %v38_v4  ;;  %v45_v11 = vunpack.c.l.bf16 %v39_v5  ;;  %v46_v12 = vunpack.c.h.bf16 %v39_v5  ;;  %v50_v51 = vld [vmem:[%s421_s2 + $0x8] sm:$0xff]  ;;  %s307_s18 = sld [smem:[#allocation2 + $0x1]] }
  0x11   :  { %70 = vperm.xlu0 %311, %v67_v0   ;;  %v37_v3 = vld [vmem:[%s420_s1] sm:$0xff]  ;;  %v47_v13 = vunpack.c.l.bf16 %v40_v6  ;;  %v48_v14 = vunpack.c.h.bf16 %v40_v6  ;;  %v140_v16 = vunpack.c.l.s4 %v328_v15  ;;  %v143_v43 = vshrl.u32 %v142_v17, 7  ;;  %v51_v57 = vld [vmem:[%s421_s2 + $0x10] sm:$0xff]  ;;  %v52_v59 = vld [vmem:[%s421_s2 + $0x18] sm:$0xff] }
  0x12   :  { %v41_v7 = vunpack.c.l.bf16 %v37_v3  ;;  %v42_v8 = vunpack.c.h.bf16 %v37_v3  ;;  %v49_v50 = vld [vmem:[%s421_s2] sm:$0xff]  ;;  %v55_v62 = vunpack.c.l.bf16 %v50_v51  ;;  %v56_v3 = vunpack.c.h.bf16 %v50_v51  ;;  %s61_s2 = sld [smem:[#allocation2]] }
  0x13   :  { %v141_v42 = vunpack.c.0.s8 %v140_v16  ;;  %v53_v60 = vunpack.c.l.bf16 %v49_v50  ;;  %v54_v61 = vunpack.c.h.bf16 %v49_v50  ;;  %v57_v6 = vunpack.c.l.bf16 %v51_v57 }
  0x14   :  { %vm176_vm0 = vcmask 1041409   ;;  %vm178_vm1 = vcmask 1043459   ;;  %vm180_vm2 = vcmask 1045509   ;;  %vm182_vm3 = vcmask 1047559  }
  0x15   :  { %189 = vperm.xlu0 %311, %v186_v2   ;;  %v397_v63 = vsub.s32 %v141_v42, %v143_v43 }
  0x8c   :  { %v71_v18 = vpop.permute.xlu0 %70 }
  0x8d   :  { %v73_v19 = vmul.f32 %v71_v18, %v41_v7  ;;  %v74_v20 = vmul.f32 %v71_v18, %v42_v8  ;;  %v75_v21 = vmul.f32 %v71_v18, %v43_v9  ;;  %v76_v22 = vmul.f32 %v71_v18, %v44_v10 }
  0x8e   :  { %v77_v23 = vmul.f32 %v71_v18, %v45_v11  ;;  %v78_v24 = vmul.f32 %v71_v18, %v46_v12  ;;  %v79_v25 = vmul.f32 %v71_v18, %v47_v13  ;;  %v80_v26 = vmul.f32 %v71_v18, %v48_v14 }
  0x8f   :  { %v81_v27 = vrot.slane %v73_v19, 4  ;;  %v87_v28 = vrot.slane %v74_v20, 4  ;;  %v93_v29 = vrot.slane %v75_v21, 4  ;;  %v99_v30 = vrot.slane %v76_v22, 4 }
  0x90   :  { %v105_v31 = vrot.slane %v77_v23, 4  ;;  %v111_v32 = vrot.slane %v78_v24, 4  ;;  %v117_v33 = vrot.slane %v79_v25, 4  ;;  %v123_v34 = vrot.slane %v80_v26, 4  ;;  %v190_v2 = vpop.permute.xlu0 %189 }
  0x91   :  { %v82_v35 = vadd.f32 %v81_v27, %v73_v19  ;;  %v88_v36 = vadd.f32 %v87_v28, %v74_v20  ;;  %v94_v37 = vadd.f32 %v93_v29, %v75_v21  ;;  %v100_v45 = vadd.f32 %v99_v30, %v76_v22 }
  0x92   :  { %v106_v38 = vadd.f32 %v105_v31, %v77_v23  ;;  %v112_v39 = vadd.f32 %v111_v32, %v78_v24  ;;  %v118_v40 = vadd.f32 %v117_v33, %v79_v25  ;;  %v124_v41 = vadd.f32 %v123_v34, %v80_v26 }
  0x93   :  { %v83_v44 = vrot.slane %v82_v35, 2  ;;  %v89_v52 = vrot.slane %v88_v36, 2  ;;  %v95_v53 = vrot.slane %v94_v37, 2  ;;  %v101_v1 = vrot.slane %v100_v45, 2 }
  0x94   :  { %v107_v46 = vrot.slane %v106_v38, 2  ;;  %v113_v47 = vrot.slane %v112_v39, 2  ;;  %v119_v48 = vrot.slane %v118_v40, 2  ;;  %v125_v49 = vrot.slane %v124_v41, 2 }
  0x95   :  { %v84_v0 = vadd.f32 %v83_v44, %v82_v35  ;;  %v90_v4 = vadd.f32 %v89_v52, %v88_v36  ;;  %v96_v5 = vadd.f32 %v95_v53, %v94_v37  ;;  %v58_v7 = vunpack.c.h.bf16 %v51_v57 }
  0x96   :  { %v108_v54 = vadd.f32 %v107_v46, %v106_v38  ;;  %v114_v55 = vadd.f32 %v113_v47, %v112_v39  ;;  %v120_v56 = vadd.f32 %v119_v48, %v118_v40  ;;  %v126_v58 = vadd.f32 %v125_v49, %v124_v41 }
  0x97   :  { %v59_v11 = vunpack.c.l.bf16 %v52_v59  ;;  %v60_v13 = vunpack.c.h.bf16 %v52_v59  ;;  %v192_v14 = vmul.f32 %v190_v2, %v53_v60  ;;  %v193_v15 = vmul.f32 %v190_v2, %v54_v61 }
  0x98   :  { %v109_v8 = vrot.slane %v108_v54, 1  ;;  %v115_v9 = vrot.slane %v114_v55, 1  ;;  %v121_v10 = vrot.slane %v120_v56, 1  ;;  %v127_v12 = vrot.slane %v126_v58, 1 }
  0x99   :  { %v85_v16 = vrot.slane %v84_v0, 1  ;;  %v102_v17 = vadd.f32 %v101_v1, %v100_v45  ;;  %v194_v18 = vmul.f32 %v190_v2, %v55_v62  ;;  %v195_v19 = vmul.f32 %v190_v2, %v56_v3 }
  0x9a   :  { %v91_v20 = vrot.slane %v90_v4, 1  ;;  %v97_v21 = vrot.slane %v96_v5, 1  ;;  %v196_v22 = vmul.f32 %v190_v2, %v57_v6  ;;  %v197_v23 = vmul.f32 %v190_v2, %v58_v7 }
  0x9b   :  { %v110_v24 = vadd.f32 %v109_v8, %v108_v54  ;;  %v116_v25 = vadd.f32 %v115_v9, %v114_v55  ;;  %v122_v26 = vadd.f32 %v121_v10, %v120_v56  ;;  %v198_v27 = vmul.f32 %v190_v2, %v59_v11 }
  0x9c   :  { %v128_v28 = vadd.f32 %v127_v12, %v126_v58  ;;  %v200_v29 = vrot.slane %v192_v14, 4  ;;  %v206_v30 = vrot.slane %v193_v15, 4  ;;  %v212_v31 = vrot.slane %v194_v18, 4 }
  0x9d   :  { %v103_v32 = vrot.slane %v102_v17, 1  ;;  %v218_v33 = vrot.slane %v195_v19, 4  ;;  %v224_v34 = vrot.slane %v196_v22, 4  ;;  %v230_v35 = vrot.slane %v197_v23, 4 }
  0x9e   :  { %v201_v36 = vadd.f32 %v200_v29, %v192_v14  ;;  %v207_v37 = vadd.f32 %v206_v30, %v193_v15  ;;  %v213_v38 = vadd.f32 %v212_v31, %v194_v18  ;;  %v236_v39 = vrot.slane %v198_v27, 4 }
  0x9f   :  { %v86_v40 = vadd.f32 %v85_v16, %v84_v0  ;;  %v219_v41 = vadd.f32 %v218_v33, %v195_v19  ;;  %v225_v42 = vadd.f32 %v224_v34, %v196_v22  ;;  %v231_v43 = vadd.f32 %v230_v35, %v197_v23  ;;  %v36_v35 = vld [vmem:[%s419_s0] sm:$0xff] }
  0xa0   :  { %v154_v44 = vcombine.low %v110_v24, %v116_v25  ;;  %v155_v45 = vcombine.low %v122_v26, %v128_v28  ;;  %v202_v46 = vrot.slane %v201_v36, 2  ;;  %v208_v47 = vrot.slane %v207_v37, 2 }
  0xa1   :  { %v214_v48 = vrot.slane %v213_v38, 2  ;;  %v220_v49 = vrot.slane %v219_v41, 2  ;;  %v226_v50 = vrot.slane %v225_v42, 2  ;;  %v232_v51 = vrot.slane %v231_v43, 2 }
  0xa2   :  { %v92_v52 = vadd.f32 %v91_v20, %v90_v4  ;;  %v98_v53 = vadd.f32 %v97_v21, %v96_v5  ;;  %v104_v54 = vadd.f32 %v103_v32, %v102_v17  ;;  %v237_v55 = vadd.f32 %v236_v39, %v198_v27 }
  0xa3   :  { %v199_v56 = vmul.f32 %v190_v2, %v60_v13  ;;  %v227_v57 = vadd.f32 %v226_v50, %v225_v42  ;;  %v233_v58 = vadd.f32 %v232_v51, %v231_v43  ;;  %v162_v59 = vrot.slane %v154_v44, %v397_v63 }
  0xa4   :  { %v169_v60 = vrot.slane %v155_v45, %v397_v63  ;;  %v203_v61 = vadd.f32 %v202_v46, %v201_v36  ;;  %v209_v62 = vadd.f32 %v208_v47, %v207_v37  ;;  %v215_v0 = vadd.f32 %v214_v48, %v213_v38 }
  0xa5   :  { %v221_v1 = vadd.f32 %v220_v49, %v219_v41  ;;  %v137_v3 = vcombine.low %v86_v40, %v92_v52  ;;  %v138_v6 = vcombine.low %v98_v53, %v104_v54  ;;  %v238_v7 = vrot.slane %v237_v55, 2 }
  0xa6   :  { %v228_v8 = vrot.slane %v227_v57, 1  ;;  %v234_v9 = vrot.slane %v233_v58, 1  ;;  %v242_v4 = vrot.slane %v199_v56, 4  ;;  %v170_v5 = vcombine.low %v162_v59, %v169_v60 }
  0xa7   :  { %v204_v10 = vrot.slane %v203_v61, 1  ;;  %v239_v11 = vadd.f32 %v238_v7, %v237_v55  ;;  %v210_v2 = vrot.slane %v209_v62, 1  ;;  %v216_v12 = vrot.slane %v215_v0, 1 }
  0xa8   :  { %v222_v13 = vrot.slane %v221_v1, 1  ;;  %v243_v14 = vadd.f32 %v242_v4, %v199_v56  ;;  %v145_v15 = vrot.slane %v137_v3, %v397_v63  ;;  %v152_v16 = vrot.slane %v138_v6, %v397_v63 }
  0xa9   :  { %v229_v17 = vadd.f32 %v228_v8, %v227_v57  ;;  %v235_v18 = vadd.f32 %v234_v9, %v233_v58  ;;  %v240_v19 = vrot.slane %v239_v11, 1  ;;  %v175_v21 = vrot.slane %v170_v5, 7 }
  0xaa   :  { %v244_v20 = vrot.slane %v243_v14, 2  ;;  %v205_v22 = vadd.f32 %v204_v10, %v203_v61  ;;  %v211_v23 = vadd.f32 %v210_v2, %v209_v62  ;;  %v217_v24 = vadd.f32 %v216_v12, %v215_v0 }
  0xab   :  { %v223_v25 = vadd.f32 %v222_v13, %v221_v1  ;;  %v153_v27 = vcombine.low %v145_v15, %v152_v16  ;;  %v241_v28 = vadd.f32 %v240_v19, %v239_v11  ;;  %v273_v30 = vcombine.low %v229_v17, %v235_v18 }
  0xac   :  { %v245_v26 = vadd.f32 %v244_v20, %v243_v14  ;;  %v256_v33 = vcombine.low %v205_v22, %v211_v23  ;;  %v62_v36 = vstv %s61_s2  ;;  %v65_v44 = vstv %s307_s18 }
  0xad   :  { %v177_v31 = vsel %vm176_vm0, %v175_v21, %v153_v27  ;;  %v257_v34 = vcombine.low %v217_v24, %v223_v25  ;;  %v281_v38 = vrot.slane %v273_v30, %v397_v63  ;;  %v63_v40 = vmul.f32 %v62_v36, %v36_v35 }
  0xae   :  { %v246_v29 = vrot.slane %v245_v26, 1  ;;  %v179_v39 = vsel %vm178_vm1, %v175_v21, %v177_v31  ;;  %v264_v41 = vrot.slane %v256_v33, %v397_v63 }
  0xaf   :  { %v271_v42 = vrot.slane %v257_v34, %v397_v63  ;;  %v181_v45 = vsel %vm180_vm2, %v175_v21, %v179_v39  ;;  %v66_v47 = vadd.f32 %v65_v44, %v63_v40 }
  0xb0   :  { %v247_v32 = vadd.f32 %v246_v29, %v245_v26  ;;  %v183_v50 = vsel %vm182_vm3, %v175_v21, %v181_v45 }
  0xb1   :  { %v272_v48 = vcombine.low %v264_v41, %v271_v42  ;;  %v185_v53 = vadd.f32 %v183_v50, %v66_v47 }
  0xb2   :  { %v274_v37 = vcombine.low %v241_v28, %v247_v32 }
  0xb4   :  { %v288_v43 = vrot.slane %v274_v37, %v397_v63 }
  0xb6   :  { %v289_v46 = vcombine.low %v281_v38, %v288_v43 }
  0xb8   :  { %v292_v49 = vrot.slane %v289_v46, 7 }
  0xba   :  { %v293_v51 = vsel %vm176_vm0, %v292_v49, %v272_v48 }
  0xbb   :  { %v294_v52 = vsel %vm178_vm1, %v292_v49, %v293_v51 }
  0xbc   :  { %v295_v54 = vsel %vm180_vm2, %v292_v49, %v294_v52 }
  0xbd   :  { %v296_v55 = vsel %vm182_vm3, %v292_v49, %v295_v54 }
  0xbe   :  { %v298_v56 = vadd.f32 %v296_v55, %v185_v53 }
  0xc0   :  { %v299_v57 = vadd.f32 %v298_v56, %v36_v35 }
  0xc2   :  { %v300_v63 = vmax.f32 %v299_v57, 0.0 }
  0xc4   :  { %301 = vst [vmem:[%s425_s6] sm:$0xff] %v300_v63 }
  0xc5   :  { %306 = vsyncpa [#allocation3], 1 }

// kernel: forward.3
= control target key start
LH: loop header
LB: loop body
LE: loop exit
PB: predicated region body
PF: predicated region fallthrough
CT: control target
= control target key end

     0   :  { %s1641_s25 = smov 2   ;;  %s1642_s26 = smov 1   ;;  %v2226_v16 = vmov 0.0   ;;  %v1645_v17 = vmov 0   ;;  %vm564_vm3 = vcmask 1040384   ;;  %vm573_vm4 = vcmask 1041408   ;;  %s2219_s1 = inlined_call_operand.vmem [shape: bf16[2,8,512], index: 1, kind: input, shape index: {}]   ;;  %s2220_s3 = inlined_call_operand.vmem [shape: f32[16,1], index: 3, kind: input, shape index: {}]   ;;  %s2221_s5 = inlined_call_operand.vmem [shape: f32[4,1], index: 5, kind: input, shape index: {}]   ;;  %s2222_s0 = inlined_call_operand.vmem [shape: bf16[2,8,512], index: 0, kind: input, shape index: {}]   ;;  %s2223_s2 = inlined_call_operand.vmem [shape: f32[16,4], index: 2, kind: input, shape index: {}]   ;;  %s2224_s4 = inlined_call_operand.vmem [shape: f32[4,16], index: 4, kind: input, shape index: {}]   ;;  %s2225_s6 = inlined_call_operand.vmem [shape: f32[2,512], index: 6, kind: output, shape index: {}]  }
   0x1   :  { %v35_v0 = vld [vmem:[%s2219_s1] sm:$0xff]  ;;  %v36_v1 = vld [vmem:[%s2219_s1 + $0x8] sm:$0xff]  ;;  %v38_v8 = vld [vmem:[%s2219_s1 + $0x18] sm:$0xff]  ;;  %s1643_s7 = smov 3   ;;  %713 = vmatprep.mubr.f32.mxu0 %v2226_v16  ;;  %790 = vmatprep.mubr.f32.mxu1 %v2226_v16  ;;  %vm582_vm5 = vcmask 1042432   ;;  %vm624_vm7 = vcmask 1043456  }
   0x2   :  { %v39_v2 = vunpack.c.l.bf16 %v35_v0  ;;  %v40_v3 = vunpack.c.h.bf16 %v35_v0  ;;  %v41_v4 = vunpack.c.l.bf16 %v36_v1  ;;  %v42_v5 = vunpack.c.h.bf16 %v36_v1  ;;  %v37_v9 = vld [vmem:[%s2219_s1 + $0x10] sm:$0xff]  ;;  %1607 = vset.pattern.permute.xlu0 %v1645_v17  ;;  %v50_v18 = vld [vmem:[%s2220_s3 + $0x8] sm:$0xff]  ;;  %1608 = vset.pattern.permute.xlu1 %v1645_v17  ;;  %v49_v19 = vld [vmem:[%s2220_s3] sm:$0xff] }
   0x3   :  { %v45_v10 = vunpack.c.l.bf16 %v38_v8  ;;  %v46_v11 = vunpack.c.h.bf16 %v38_v8  ;;  %v43_v12 = vunpack.c.l.bf16 %v37_v9  ;;  %v44_v13 = vunpack.c.h.bf16 %v37_v9  ;;  %v52_v20 = vld [vmem:[%s2221_s5] sm:$0xf]  ;;  %v24_v22 = vld [vmem:[%s2222_s0 + $0x8] sm:$0xff]  ;;  %v26_v26 = vld [vmem:[%s2222_s0 + $0x18] sm:$0xff] }
   0x4   :  { %v1557_v6 = vpack.i.bf16 %v40_v3, %v39_v2  ;;  %v1562_v7 = vpack.i.bf16 %v42_v5, %v41_v4  ;;  %v23_v21 = vld [vmem:[%s2222_s0] sm:$0xff]  ;;  %v1715_v25 = vunpack.c.h.bf16 %v24_v22  ;;  %v25_v27 = vld [vmem:[%s2222_s0 + $0x10] sm:$0xff]  ;;  %v1724_v29 = vunpack.c.l.bf16 %v24_v22 }
   0x5   :  { %v1582_v14 = vpack.i.bf16 %v46_v11, %v45_v10  ;;  %v1577_v15 = vpack.i.bf16 %v44_v13, %v43_v12  ;;  %v1711_v23 = vunpack.c.h.bf16 %v23_v21  ;;  %v1713_v24 = vunpack.c.l.bf16 %v23_v21 }
   0x6   :  { %1558 = vrot.lane.b32.xlu1 %v1557_v6, %s1641_s25  ;;  %1548 = vrot.lane.b32.xlu0 %v1557_v6, %s1642_s26  ;;  %v164_v30 = vmul.f32 %v42_v5, %v1715_v25  ;;  %v1728_v32 = vunpack.c.h.bf16 %v26_v26  ;;  %v1730_v33 = vunpack.c.h.bf16 %v25_v27  ;;  %v163_v34 = vmul.f32 %v41_v4, %v1724_v29 }
   0x7   :  { %v162_v28 = vmul.f32 %v40_v3, %v1711_v23  ;;  %v161_v31 = vmul.f32 %v39_v2, %v1713_v24  ;;  %v1733_v35 = vunpack.c.l.bf16 %v25_v27  ;;  %v1735_v36 = vunpack.c.l.bf16 %v26_v26 }
   0x8   :  { %v190_v38 = vmul.f32 %v44_v13, %v1730_v33  ;;  %v192_v39 = vmul.f32 %v46_v11, %v1728_v32  ;;  %v183_v40 = vrot.slane %v164_v30, 4  ;;  %v177_v44 = vrot.slane %v163_v34, 4 }
   0x9   :  { %v171_v37 = vrot.slane %v162_v28, 4  ;;  %v165_v41 = vrot.slane %v161_v31, 4  ;;  %v189_v42 = vmul.f32 %v43_v12, %v1733_v35  ;;  %v191_v43 = vmul.f32 %v45_v10, %v1735_v36 }
   0xa   :  { %1563 = vrot.lane.b32.xlu1 %v1562_v7, %s1641_s25  ;;  %1553 = vrot.lane.b32.xlu0 %v1562_v7, %s1642_s26  ;;  %v199_v46 = vrot.slane %v190_v38, 4  ;;  %v211_v47 = vrot.slane %v192_v39, 4  ;;  %v184_v48 = vadd.f32 %v183_v40, %v164_v30  ;;  %v178_v52 = vadd.f32 %v177_v44, %v163_v34 }
   0xb   :  { %v172_v45 = vadd.f32 %v171_v37, %v162_v28  ;;  %v166_v49 = vadd.f32 %v165_v41, %v161_v31  ;;  %v193_v50 = vrot.slane %v189_v42, 4  ;;  %v205_v51 = vrot.slane %v191_v43, 4 }
   0xc   :  { %v200_v54 = vadd.f32 %v199_v46, %v190_v38  ;;  %v212_v55 = vadd.f32 %v211_v47, %v192_v39  ;;  %v185_v56 = vrot.slane %v184_v48, 2  ;;  %v179_v60 = vrot.slane %v178_v52, 2 }
   0xd   :  { %v173_v53 = vrot.slane %v172_v45, 2  ;;  %v167_v57 = vrot.slane %v166_v49, 2  ;;  %v194_v58 = vadd.f32 %v193_v50, %v189_v42  ;;  %v206_v59 = vadd.f32 %v205_v51, %v191_v43 }
   0xe   :  { %1573 = vrot.lane.b32.xlu1 %v1562_v7, %s1643_s7  ;;  %1568 = vrot.lane.b32.xlu0 %v1557_v6, %s1643_s7  ;;  %v201_v62 = vrot.slane %v200_v54, 2  ;;  %v213_v63 = vrot.slane %v212_v55, 2  ;;  %v186_v0 = vadd.f32 %v185_v56, %v184_v48  ;;  %v53_v4 = vlaneseq }
   0xf   :  { %v174_v61 = vadd.f32 %v173_v53, %v172_v45  ;;  %v168_v1 = vadd.f32 %v167_v57, %v166_v49  ;;  %v195_v2 = vrot.slane %v194_v58, 2  ;;  %v207_v3 = vrot.slane %v206_v59, 2 }
  0x10   :  { %v180_v5 = vadd.f32 %v179_v60, %v178_v52  ;;  %v202_v7 = vadd.f32 %v201_v62, %v200_v54  ;;  %v214_v8 = vadd.f32 %v213_v63, %v212_v55  ;;  %v187_v9 = vrot.slane %v186_v0, 1 }
  0x11   :  { %v175_v6 = vrot.slane %v174_v61, 1  ;;  %v169_v10 = vrot.slane %v168_v1, 1  ;;  %v196_v11 = vadd.f32 %v195_v2, %v194_v58  ;;  %v208_v12 = vadd.f32 %v207_v3, %v206_v59 }
  0x12   :  { %1583 = vrot.lane.b32.xlu1 %v1582_v14, %s1642_s26  ;;  %1578 = vrot.lane.b32.xlu0 %v1577_v15, %s1642_s26  ;;  %v1741_v13 = vand.u32 127, %v53_v4  ;;  %v1757_v37 = vshrl.u32 %v53_v4, 7  ;;  %vm617_vm10 = vcmask 31744  }
  0x13   :  { %v170_v21 = vadd.f32 %v169_v10, %v168_v1  ;;  %v197_v22 = vrot.slane %v196_v11, 1  ;;  %v209_v26 = vrot.slane %v208_v12, 1 }
  0x14   :  { %v1744_v17 = vadd.s32 128, %v1741_v13  ;;  %v1747_v27 = vadd.s32 384, %v1741_v13  ;;  %v1750_v28 = vadd.s32 256, %v1741_v13  ;;  %vm322_vm0 = vcmp.lt.s32.totalorder %v1741_v13, 2 }
  0x15   :  { %vm233_vm1 = vcmp.lt.s32.totalorder %v1741_v13, 1  ;;  %v1761_v41 = vmul.f32 0.125, %v170_v21  ;;  %v198_v42 = vadd.f32 %v197_v22, %v196_v11  ;;  %v210_v43 = vadd.f32 %v209_v26, %v208_v12 }
  0x16   :  { %1593 = vrot.lane.b32.xlu1 %v1582_v14, %s1641_s25  ;;  %1588 = vrot.lane.b32.xlu0 %v1577_v15, %s1641_s25  ;;  %v1769_v54 = vadd.s32 640, %v1741_v13  ;;  %v1774_v56 = vadd.s32 896, %v1741_v13  ;;  %v1789_v2 = vadd.s32 512, %v1741_v13  ;;  %v1792_v3 = vadd.s32 768, %v1741_v13 }
  0x17   :  { %v1782_v60 = vmul.f32 0.125, %v198_v42  ;;  %vm411_vm2 = vcmp.lt.s32.totalorder %v1741_v13, 3 }
  0x18   :  { %2229 = vst [vmem:[#allocation2_spill] sm:$0xff] %v1792_v3 }
  0x1a   :  { %1603 = vrot.lane.b32.xlu1 %v1582_v14, %s1643_s7  ;;  %1598 = vrot.lane.b32.xlu0 %v1577_v15, %s1643_s7  ;;  %v181_v14 = vrot.slane %v180_v5, 1  ;;  %v176_v15 = vadd.f32 %v175_v6, %v174_v61  ;;  %v1784_v61 = vmul.f32 0.125, %v210_v43 }
  0x1c   :  { %v182_v30 = vadd.f32 %v181_v14, %v180_v5  ;;  %v1754_v31 = vmul.f32 0.125, %v176_v15 }
  0x1e   :  { %614 = vperm.xlu0 %1607, %v50_v18   ;;  %609 = vperm.xlu1 %1608, %v49_v19   ;;  %v203_v18 = vrot.slane %v202_v7, 1  ;;  %v215_v19 = vrot.slane %v214_v8, 1  ;;  %v1766_v49 = vmul.f32 0.125, %v182_v30 }
  0x20   :  { %v204_v38 = vadd.f32 %v203_v18, %v202_v7  ;;  %v216_v39 = vadd.f32 %v215_v19, %v214_v8 }
  0x22   :  { %975 = vperm.xlu1 %1608, %v52_v20   ;;  %v188_v20 = vadd.f32 %v187_v9, %v186_v0  ;;  %v1771_v55 = vmul.f32 0.125, %v204_v38  ;;  %v1776_v57 = vmul.f32 0.125, %v216_v39 }
  0x24   :  { %v1759_v40 = vmul.f32 0.125, %v188_v20 }
  0x78   :  { %v1559_v44 = vpop.permute.xlu1 %1558  ;;  %v1549_v45 = vpop.permute.xlu0 %1548 }
  0x79   :  { %v1561_v50 = vunpack.i.h.bf16 %v1559_v44  ;;  %v1560_v51 = vunpack.i.l.bf16 %v1559_v44  ;;  %v1551_v52 = vunpack.i.h.bf16 %v1549_v45  ;;  %v1550_v53 = vunpack.i.l.bf16 %v1549_v45 }
  0x7b   :  { %v325_v58 = vsel %vm322_vm0, %v1560_v51, %v1561_v50  ;;  %v236_v59 = vsel %vm233_vm1, %v1550_v53, %v1551_v52 }
  0x7c   :  { %v328_v62 = vmul.f32 %v325_v58, %v1711_v23  ;;  %v239_v63 = vmul.f32 %v236_v59, %v1711_v23  ;;  %v1564_v0 = vpop.permute.xlu1 %1563  ;;  %v1554_v1 = vpop.permute.xlu0 %1553 }
  0x7d   :  { %v1566_v4 = vunpack.i.h.bf16 %v1564_v0  ;;  %v1565_v5 = vunpack.i.l.bf16 %v1564_v0  ;;  %v1556_v6 = vunpack.i.h.bf16 %v1554_v1  ;;  %v1555_v7 = vunpack.i.l.bf16 %v1554_v1 }
  0x7e   :  { %v337_v8 = vrot.slane %v328_v62, 4  ;;  %v248_v9 = vrot.slane %v239_v63, 4 }
  0x7f   :  { %v323_v12 = vsel %vm322_vm0, %v1565_v5, %v1566_v4  ;;  %v324_v14 = vsel %vm322_vm0, %v1561_v50, %v1565_v5  ;;  %v326_v15 = vsel %vm322_vm0, %v1566_v4, %v1560_v51  ;;  %v234_v18 = vsel %vm233_vm1, %v1555_v7, %v1556_v6 }
  0x80   :  { %v249_v19 = vadd.f32 %v248_v9, %v239_v63  ;;  %v327_v20 = vmul.f32 %v326_v15, %v1713_v24  ;;  %v329_v21 = vmul.f32 %v324_v14, %v1724_v29  ;;  %v1574_v22 = vpop.permute.xlu1 %1573  ;;  %v330_v30 = vmul.f32 %v323_v12, %v1715_v25 }
  0x81   :  { %v235_v38 = vsel %vm233_vm1, %v1551_v52, %v1555_v7  ;;  %v237_v39 = vsel %vm233_vm1, %v1556_v6, %v1550_v53  ;;  %v241_v42 = vmul.f32 %v234_v18, %v1715_v25  ;;  %v1814_v43 = vadd.f32 %v337_v8, %v328_v62  ;;  %v1569_v7 = vpop.permute.xlu0 %1568 }
  0x82   :  { %v250_v44 = vrot.slane %v249_v19, 2  ;;  %v331_v45 = vrot.slane %v327_v20, 4  ;;  %v343_v50 = vrot.slane %v329_v21, 4  ;;  %v349_v51 = vrot.slane %v330_v30, 4 }
  0x83   :  { %v238_v58 = vmul.f32 %v237_v39, %v1713_v24  ;;  %v240_v59 = vmul.f32 %v235_v38, %v1724_v29  ;;  %v260_v63 = vrot.slane %v241_v42, 4  ;;  %v1576_v4 = vunpack.i.h.bf16 %v1574_v22 }
  0x84   :  { %v1818_v0 = vadd.f32 %v250_v44, %v249_v19  ;;  %v332_v1 = vadd.f32 %v331_v45, %v327_v20  ;;  %v344_v52 = vadd.f32 %v343_v50, %v329_v21  ;;  %v1820_v5 = vadd.f32 %v349_v51, %v330_v30  ;;  %v1584_v14 = vpop.permute.xlu1 %1583 }
  0x85   :  { %v242_v53 = vrot.slane %v238_v58, 4  ;;  %v254_v6 = vrot.slane %v240_v59, 4  ;;  %v261_v62 = vadd.f32 %v260_v63, %v241_v42  ;;  %v1575_v12 = vunpack.i.l.bf16 %v1574_v22  ;;  %v1579_v11 = vpop.permute.xlu0 %1578 }
  0x86   :  { %v333_v9 = vrot.slane %v332_v1, 2  ;;  %v345_v18 = vrot.slane %v344_v52, 2  ;;  %v1571_v42 = vunpack.i.h.bf16 %v1569_v7  ;;  %v1585_v63 = vunpack.i.l.bf16 %v1584_v14 }
  0x87   :  { %v243_v38 = vadd.f32 %v242_v53, %v238_v58  ;;  %v255_v19 = vadd.f32 %v254_v6, %v240_v59  ;;  %v262_v39 = vrot.slane %v261_v62, 2  ;;  %v412_v30 = vsel %vm411_vm2, %v1575_v12, %v1576_v4 }
  0x88   :  { %v419_v22 = vmul.f32 %v412_v30, %v1715_v25  ;;  %v413_v51 = vsel %vm411_vm2, %v1571_v42, %v1575_v12  ;;  %v1570_v58 = vunpack.i.l.bf16 %v1569_v7  ;;  %v1586_v59 = vunpack.i.h.bf16 %v1584_v14 }
  0x89   :  { %v244_v44 = vrot.slane %v243_v38, 2  ;;  %v256_v45 = vrot.slane %v255_v19, 2  ;;  %v1828_v50 = vadd.f32 %v262_v39, %v261_v62  ;;  %v1833_v53 = vadd.f32 %v333_v9, %v332_v1  ;;  %v1594_v1 = vpop.permute.xlu1 %1593 }
  0x8a   :  { %v1835_v6 = vadd.f32 %v345_v18, %v344_v52  ;;  %v414_v62 = vsel %vm411_vm2, %v1570_v58, %v1571_v42  ;;  %v415_v25 = vsel %vm411_vm2, %v1576_v4, %v1570_v58  ;;  %v418_v12 = vmul.f32 %v413_v51, %v1724_v29 }
  0x8b   :  { %v1837_v15 = vadd.f32 %v244_v44, %v243_v38  ;;  %v1839_v16 = vadd.f32 %v256_v45, %v255_v19  ;;  %v274_v7 = vsel %vm233_vm1, %v1585_v63, %v1586_v59  ;;  %v438_v14 = vrot.slane %v419_v22, 4 }
  0x8c   :  { %v416_v18 = vmul.f32 %v415_v25, %v1713_v24  ;;  %v417_v38 = vmul.f32 %v414_v62, %v1711_v23  ;;  %v432_v19 = vrot.slane %v418_v12, 4  ;;  %v281_v39 = vmul.f32 %v274_v7, %v1728_v32 }
  0x8d   :  { %v1581_v30 = vunpack.i.h.bf16 %v1579_v11  ;;  %v1580_v42 = vunpack.i.l.bf16 %v1579_v11  ;;  %v1596_v29 = vunpack.i.h.bf16 %v1594_v1  ;;  %v1595_v44 = vunpack.i.l.bf16 %v1594_v1  ;;  %v1589_v11 = vpop.permute.xlu0 %1588 }
  0x8e   :  { %v420_v4 = vrot.slane %v416_v18, 4  ;;  %v426_v51 = vrot.slane %v417_v38, 4  ;;  %v300_v58 = vrot.slane %v281_v39, 4  ;;  %v1856_v10 = vadd.f32 %v432_v19, %v418_v12 }
  0x8f   :  { %v275_v26 = vsel %vm233_vm1, %v1581_v30, %v1585_v63  ;;  %v276_v23 = vsel %vm233_vm1, %v1580_v42, %v1581_v30  ;;  %v277_v24 = vsel %vm233_vm1, %v1586_v59, %v1580_v42  ;;  %v1863_v25 = vadd.f32 %v438_v14, %v419_v22 }
  0x90   :  { %v280_v62 = vmul.f32 %v275_v26, %v1735_v36  ;;  %v1865_v7 = vadd.f32 %v420_v4, %v416_v18  ;;  %v301_v1 = vadd.f32 %v300_v58, %v281_v39  ;;  %v278_v48 = vmul.f32 %v277_v24, %v1733_v35 }
  0x91   :  { %v1868_v45 = vadd.f32 %v426_v51, %v417_v38  ;;  %v279_v63 = vmul.f32 %v276_v23, %v1730_v33  ;;  %v363_v19 = vsel %vm322_vm0, %v1595_v44, %v1596_v29  ;;  %v1591_v42 = vunpack.i.h.bf16 %v1589_v11  ;;  %v1599_v8 = vpop.permute.xlu0 %1598 }
  0x92   :  { %v294_v12 = vrot.slane %v280_v62, 4  ;;  %v302_v30 = vrot.slane %v301_v1, 2  ;;  %v282_v59 = vrot.slane %v278_v48, 4  ;;  %v370_v26 = vmul.f32 %v363_v19, %v1728_v32 }
  0x93   :  { %v288_v14 = vrot.slane %v279_v63, 4  ;;  %v1590_v39 = vunpack.i.l.bf16 %v1589_v11  ;;  %v364_v51 = vsel %vm322_vm0, %v1591_v42, %v1595_v44  ;;  %v1604_v44 = vpop.permute.xlu1 %1603 }
  0x94   :  { %v295_v18 = vadd.f32 %v294_v12, %v280_v62  ;;  %v303_v4 = vadd.f32 %v302_v30, %v301_v1  ;;  %v283_v58 = vadd.f32 %v282_v59, %v278_v48  ;;  %v389_v38 = vrot.slane %v370_v26, 4 }
  0x95   :  { %v289_v23 = vadd.f32 %v288_v14, %v279_v63  ;;  %v365_v47 = vsel %vm322_vm0, %v1590_v39, %v1591_v42  ;;  %v366_v19 = vsel %vm322_vm0, %v1596_v29, %v1590_v39  ;;  %v369_v12 = vmul.f32 %v364_v51, %v1735_v36 }
  0x96   :  { %v296_v24 = vrot.slane %v295_v18, 2  ;;  %v304_v52 = vrot.slane %v303_v4, 1  ;;  %v284_v46 = vrot.slane %v283_v58, 2  ;;  %v390_v22 = vadd.f32 %v389_v38, %v370_v26 }
  0x97   :  { %v367_v62 = vmul.f32 %v366_v19, %v1733_v35  ;;  %v290_v11 = vrot.slane %v289_v23, 2  ;;  %v368_v48 = vmul.f32 %v365_v47, %v1730_v33  ;;  %v383_v29 = vrot.slane %v369_v12, 4 }
  0x98   :  { %v297_v1 = vadd.f32 %v296_v24, %v295_v18  ;;  %v305_v63 = vadd.f32 %v304_v52, %v303_v4  ;;  %v285_v30 = vadd.f32 %v284_v46, %v283_v58  ;;  %v391_v59 = vrot.slane %v390_v22, 2 }
  0x99   :  { %v371_v14 = vrot.slane %v367_v62, 4  ;;  %v291_v42 = vadd.f32 %v290_v11, %v289_v23  ;;  %v377_v34 = vrot.slane %v368_v48, 4  ;;  %v1606_v38 = vunpack.i.h.bf16 %v1604_v44 }
  0x9a   :  { %v298_v21 = vrot.slane %v297_v1, 1  ;;  %v286_v39 = vrot.slane %v285_v30, 1  ;;  %v1884_v9 = vadd.f32 %v391_v59, %v390_v22  ;;  %v384_v47 = vadd.f32 %v383_v29, %v369_v12 }
  0x9b   :  { %v372_v26 = vadd.f32 %v371_v14, %v367_v62  ;;  %v292_v19 = vrot.slane %v291_v42, 1  ;;  %v378_v24 = vadd.f32 %v377_v34, %v368_v48  ;;  %v422_v51 = vrot.slane %v1865_v7, 2 }
  0x9c   :  { %v299_v18 = vadd.f32 %v298_v21, %v297_v1  ;;  %v287_v52 = vadd.f32 %v286_v39, %v285_v30  ;;  %v1605_v4 = vunpack.i.l.bf16 %v1604_v44  ;;  %v1887_v58 = vmul.f32 0.125, %v305_v63 }
  0x9d   :  { %v373_v46 = vrot.slane %v372_v26, 2  ;;  %v293_v23 = vadd.f32 %v292_v19, %v291_v42  ;;  %v379_v11 = vrot.slane %v378_v24, 2  ;;  %v385_v20 = vrot.slane %v384_v47, 2 }
  0x9e   :  { %v1889_v3 = vmul.f32 0.125, %v287_v52  ;;  %v452_v62 = vsel %vm411_vm2, %v1605_v4, %v1606_v38  ;;  %v1601_v21 = vunpack.i.h.bf16 %v1599_v8  ;;  %v1893_v34 = vmul.f32 0.125, %v299_v18 }
  0x9f   :  { %v374_v22 = vadd.f32 %v373_v46, %v372_v26  ;;  %v393_v1 = vrot.slane %v1884_v9, 1  ;;  %v1896_v48 = vadd.f32 %v379_v11, %v378_v24  ;;  %v386_v12 = vadd.f32 %v385_v20, %v384_v47 }
  0xa0   :  { %v1898_v44 = vmul.f32 0.125, %v293_v23  ;;  %v459_v30 = vmul.f32 %v452_v62, %v1728_v32  ;;  %v453_v59 = vsel %vm411_vm2, %v1601_v21, %v1605_v4  ;;  %v1600_v29 = vunpack.i.l.bf16 %v1599_v8 }
  0xa1   :  { %v375_v63 = vrot.slane %v374_v22, 1  ;;  %v387_v42 = vrot.slane %v386_v12, 1  ;;  %v458_v39 = vmul.f32 %v453_v59, %v1735_v36  ;;  %v2230_v18 = vrot.slane %v1818_v0, 1 }
  0xa2   :  { %v478_v19 = vrot.slane %v459_v30, 4  ;;  %v2231_v24 = vrot.slane %v1814_v43, 2  ;;  %v381_v32 = vrot.slane %v1896_v48, 1  ;;  %v454_v52 = vsel %vm411_vm2, %v1600_v29, %v1601_v21 }
  0xa3   :  { %v376_v26 = vadd.f32 %v375_v63, %v374_v22  ;;  %v253_v20 = vadd.f32 %v2230_v18, %v1818_v0  ;;  %v455_v8 = vsel %vm411_vm2, %v1606_v38, %v1600_v29  ;;  %v472_v36 = vrot.slane %v458_v39, 4 }
  0xa4   :  { %v340_v47 = vadd.f32 %v2231_v24, %v1814_v43  ;;  %v388_v46 = vadd.f32 %v387_v42, %v386_v12  ;;  %v479_v4 = vadd.f32 %v478_v19, %v459_v30  ;;  %v456_v23 = vmul.f32 %v455_v8, %v1733_v35 }
  0xa5   :  { %v457_v0 = vmul.f32 %v454_v52, %v1730_v33  ;;  %v1918_v11 = vmul.f32 0.125, %v376_v26  ;;  %v473_v22 = vadd.f32 %v472_v36, %v458_v39  ;;  %v307_v43 = vmul.f32 0.125, %v253_v20 }
  0xa6   :  { %v341_v62 = vrot.slane %v340_v47, 1  ;;  %v480_v63 = vrot.slane %v479_v4, 2  ;;  %v460_v59 = vrot.slane %v456_v23, 4  ;;  %v428_v21 = vrot.slane %v1868_v45, 2 }
  0xa7   :  { %v466_v18 = vrot.slane %v457_v0, 4  ;;  %v474_v24 = vrot.slane %v473_v22, 2  ;;  %v501_v38 = vrot.slane %v307_v43, 7  ;;  %v2232_v12 = vrot.slane %v1828_v50, 1 }
  0xa8   :  { %v342_v14 = vadd.f32 %v341_v62, %v340_v47  ;;  %v1924_v30 = vmul.f32 0.125, %v388_v46  ;;  %v461_v33 = vadd.f32 %v460_v59, %v456_v23  ;;  %v429_v29 = vadd.f32 %v428_v21, %v1868_v45 }
  0xa9   :  { %v265_v35 = vadd.f32 %v2232_v12, %v1828_v50  ;;  %v467_v42 = vadd.f32 %v466_v18, %v457_v0  ;;  %v2233_v39 = vand.u32 31, %v1744_v17  ;;  %v1934_v19 = vadd.f32 %v474_v24, %v473_v22 }
  0xaa   :  { %v396_v20 = vmul.f32 0.125, %v342_v14  ;;  %v566_v47 = vsel %vm564_vm3, %v1754_v31, %v501_v38  ;;  %v462_v52 = vrot.slane %v461_v33, 2  ;;  %v430_v36 = vrot.slane %v429_v29, 1 }
  0xab   :  { %vm1930_vm6 = vcmp.ge.s32.totalorder %v2233_v39, %v1757_v37  ;;  %v309_v50 = vmul.f32 0.125, %v265_v35  ;;  %v468_v8 = vrot.slane %v467_v42, 2  ;;  %v2236_v45 = vrot.slane %v1820_v5, 2 }
  0xac   :  { %v1941_v17 = vadd.f32 %v480_v63, %v479_v4  ;;  %v525_v23 = vrot.slane %v396_v20, 6  ;;  %v440_v0 = vrot.slane %v1863_v25, 2  ;;  %v1944_v43 = vadd.f32 %v462_v52, %v461_v33  ;;  %v2037_v4 = vld [vmem:[%s2223_s2] sm:$0xff] }
  0xad   :  { %v352_v46 = vadd.f32 %v2236_v45, %v1820_v5  ;;  %v503_v22 = vrot.slane %v309_v50, 7  ;;  %v476_v14 = vrot.slane %v1934_v19, 1  ;;  %v431_v31 = vadd.f32 %v430_v36, %v429_v29 }
  0xae   :  { %v469_v59 = vadd.f32 %v468_v8, %v467_v42  ;;  %v575_v18 = vsel %vm573_vm4, %v566_v47, %v525_v23  ;;  %v441_v21 = vadd.f32 %v440_v0, %v1863_v25  ;;  %v2237_v5 = vand.u32 31, %v1747_v27 }
  0xaf   :  { %v353_v62 = vrot.slane %v352_v46, 1  ;;  %v2240_v63 = vrot.slane %v1837_v15, 1  ;;  %v485_v38 = vmul.f32 0.125, %v431_v31  ;;  %v568_v35 = vsel %vm564_vm3, %v1759_v40, %v503_v22 }
  0xb0   :  { %vm1952_vm8 = vcmp.ge.s32.totalorder %v2237_v5, %v1757_v37  ;;  %v335_v33 = vrot.slane %v1833_v53, 1  ;;  %v442_v42 = vrot.slane %v441_v21, 1  ;;  %v423_v27 = vadd.f32 %v422_v51, %v1865_v7 }
  0xb1   :  { %v247_v24 = vadd.f32 %v2240_v63, %v1837_v15  ;;  %v354_v12 = vadd.f32 %v353_v62, %v352_v46  ;;  %v2241_v29 = vand.u32 31, %v1741_v13  ;;  %v2244_v15 = vrot.slane %v1839_v16, 1 }
  0xb2   :  { %v549_v40 = vrot.slane %v485_v38, 5  ;;  %v336_v50 = vadd.f32 %v335_v33, %v1833_v53  ;;  %v347_v52 = vrot.slane %v1835_v6, 1  ;;  %v443_v8 = vadd.f32 %v442_v42, %v441_v21 }
  0xb3   :  { %v306_v25 = vmul.f32 0.125, %v247_v24  ;;  %vm1968_vm9 = vcmp.ge.s32.totalorder %v2241_v29, %v1757_v37  ;;  %v259_v20 = vadd.f32 %v2244_v15, %v1839_v16  ;;  %v398_v47 = vmul.f32 0.125, %v354_v12 }
  0xb4   :  { %v424_v36 = vrot.slane %v423_v27, 1  ;;  %v584_v13 = vsel %vm582_vm5, %v575_v18, %v549_v40  ;;  %v395_v46 = vmul.f32 0.125, %v336_v50  ;;  %v348_v23 = vadd.f32 %v347_v52, %v1835_v6 }
  0xb5   :  { %v500_v7 = vrot.slane %v306_v25, 7  ;;  %v308_v51 = vmul.f32 0.125, %v259_v20  ;;  %v527_v45 = vrot.slane %v398_v47, 6  ;;  %v1981_v16 = vsel %vm1930_vm6, %v584_v13, 0.0 }
  0xb6   :  { %v487_v0 = vmul.f32 0.125, %v443_v8  ;;  %v425_v22 = vadd.f32 %v424_v36, %v423_v27  ;;  %v464_v31 = vrot.slane %v1944_v43, 1  ;;  %1521 = vmatprep.subr.msk.mxu0 %vm624_vm7, %v1981_v16  ;;  %v524_v62 = vrot.slane %v395_v46, 6 }
  0xb7   :  { %v565_v53 = vsel %vm564_vm3, %v1761_v41, %v500_v7  ;;  %v397_v18 = vmul.f32 0.125, %v348_v23  ;;  %v2245_v21 = vrot.slane %v1856_v10, 2  ;;  %v2246_v26 = vand.u32 31, %v1750_v28 }
  0xb8   :  { %v2249_v41 = vand.u32 31, %v1769_v54  ;;  %v551_v24 = vrot.slane %v487_v0, 5  ;;  %v484_v38 = vmul.f32 0.125, %v425_v22  ;;  %v502_v12 = vrot.slane %v308_v51, 7  ;;  %v48_v22 = vld [vmem:[%s2223_s2 + $0x8] sm:$0xff] }
  0xb9   :  { %v435_v6 = vadd.f32 %v2245_v21, %v1856_v10  ;;  %vm1994_vm11 = vcmp.ge.s32.totalorder %v2246_v26, %v1757_v37  ;;  %v382_v10 = vadd.f32 %v381_v32, %v1896_v48  ;;  %v577_v28 = vsel %vm573_vm4, %v568_v35, %v527_v45 }
  0xba   :  { %vm2001_vm12 = vcmp.ge.s32.totalorder %v2249_v41, %v1757_v37  ;;  %v574_v33 = vsel %vm573_vm4, %v565_v53, %v524_v62  ;;  %v470_v25 = vrot.slane %v469_v59, 1  ;;  %v586_v27 = vsel %vm582_vm5, %v577_v28, %v551_v24  ;;  %v2260_v28 = vld [vmem:[#allocation2_spill] sm:$0xff] }
  0xbb   :  { %v436_v42 = vrot.slane %v435_v6, 1  ;;  %v548_v54 = vrot.slane %v484_v38, 5  ;;  %v526_v29 = vrot.slane %v397_v18, 6  ;;  %v400_v15 = vmul.f32 0.125, %v382_v10 }
  0xbc   :  { %v2252_v20 = vand.u32 31, %v1789_v2  ;;  %v2020_v48 = vsel %vm1952_vm8, %v586_v27, 0.0  ;;  %v567_v35 = vsel %vm564_vm3, %v1766_v49, %v502_v12  ;;  %v471_v47 = vadd.f32 %v470_v25, %v469_v59 }
  0xbd   :  { %v437_v32 = vadd.f32 %v436_v42, %v435_v6  ;;  %v2255_v50 = vand.u32 31, %v1774_v56  ;;  %1525 = vmatprep.subr.msk.mxu1 %vm624_vm7, %v2020_v48  ;;  %v583_v2 = vsel %vm582_vm5, %v574_v33, %v548_v54  ;;  %v505_v49 = vrot.slane %v1898_v44, 7 }
  0xbe   :  { %vm2014_vm13 = vcmp.ge.s32.totalorder %v2252_v20, %v1757_v37  ;;  %v529_v59 = vrot.slane %v400_v15, 6  ;;  %v394_v56 = vadd.f32 %v393_v1, %v1884_v9  ;;  %v2045_v8 = vsel %vm1968_vm9, %v583_v2, 0.0  ;;  %v610_v20 = vpop.permute.xlu1 %609 }
  0xbf   :  { %vm2027_vm14 = vcmp.ge.s32.totalorder %v2255_v50, %v1757_v37  ;;  %v486_v36 = vmul.f32 0.125, %v437_v32  ;;  %v489_v7 = vmul.f32 0.125, %v471_v47  ;;  %v482_v51 = vrot.slane %v1941_v17, 1  ;;  %1522 = vmatpush1.msk.msra.mxu0 %vm624_vm7, %v2045_v8 }
  0xc0   :  { %v576_v13 = vsel %vm573_vm4, %v567_v35, %v526_v29  ;;  %v570_v44 = vsel %vm564_vm3, %v1771_v55, %v505_v49  ;;  %v402_v45 = vmul.f32 0.125, %v394_v56  ;;  %v465_v46 = vadd.f32 %v464_v31, %v1944_v43  ;;  %1523 = vmatmul.mubr.msk.f32.vlgmr.msra.gmra.mxu0 %vm617_vm10, %v2037_v4  ;;  %v615_v29 = vpop.permute.xlu0 %614 }
  0xc1   :  { %v550_v9 = vrot.slane %v486_v36, 5  ;;  %v553_v1 = vrot.slane %v489_v7, 5  ;;  %v483_v39 = vadd.f32 %v482_v51, %v1941_v17  ;;  %v507_v23 = vrot.slane %v1887_v58, 7 }
  0xc2   :  { %v2258_v0 = vmov 0.0   ;;  %v579_v55 = vsel %vm573_vm4, %v570_v44, %v529_v59  ;;  %v531_v53 = vrot.slane %v402_v45, 6  ;;  %v488_v62 = vmul.f32 0.125, %v465_v46 }
  0xc3   :  { %719 = vmatprep.mubr.f32.mxu0 %v2258_v0  ;;  %v528_v43 = vrot.slane %v1918_v11, 6  ;;  %v506_v31 = vrot.slane %v1893_v34, 7  ;;  %v585_v18 = vsel %vm582_vm5, %v576_v13, %v550_v9  ;;  %v588_v17 = vsel %vm582_vm5, %v579_v55, %v553_v1  ;;  %v51_v9 = vld [vmem:[%s2224_s4] sm:$0xf] }
  0xc4   :  { %v491_v21 = vmul.f32 0.125, %v483_v39  ;;  %v2069_v58 = vsel %vm1994_vm11, %v585_v18, 0.0  ;;  %v2073_v6 = vsel %vm2001_vm12, %v588_v17, 0.0  ;;  %v552_v26 = vrot.slane %v488_v62, 5  ;;  %1524 = vmatmul.mubr.msk.f32.gmra.mxu0 %vm617_vm10, %v48_v22 }
  0xc5   :  { %v2259_v41 = vrot.slane %v1889_v3, 7  ;;  %1526 = vmatpush1.msk.msra.mxu1 %vm624_vm7, %v2069_v58  ;;  %v572_v5 = vsel %vm564_vm3, %v1776_v57, %v507_v23  ;;  %v477_v63 = vadd.f32 %v476_v14, %v1934_v19  ;;  %1529 = vmatprep.subr.msk.mxu0 %vm624_vm7, %v2073_v6  ;;  %v530_v38 = vrot.slane %v1924_v30, 6 }
  0xc6   :  { %v555_v34 = vrot.slane %v491_v21, 5  ;;  %1527 = vmatmul.mubr.msk.f32.vlgmr.msra.gmra.mxu1 %vm617_vm10, %v2037_v4  ;;  %867 = vmatprep.mubr.f32.mxu0 %v2258_v0  ;;  %v571_v10 = vsel %vm564_vm3, %v1784_v61, %v506_v31  ;;  %v2261_v33 = vand.u32 31, %v2260_v28  ;;  %vm978_vm0 = vcmask 130048  }
  0xc7   :  { %v569_v11 = vsel %vm564_vm3, %v1782_v60, %v2259_v41  ;;  %v581_v60 = vsel %vm573_vm4, %v572_v5, %v531_v53  ;;  %796 = vmatprep.mubr.f32.mxu1 %v2258_v0  ;;  %v490_v19 = vmul.f32 0.125, %v477_v63  ;;  %v580_v42 = vsel %vm573_vm4, %v571_v10, %v530_v38 }
  0xc8   :  { %v578_v24 = vsel %vm573_vm4, %v569_v11, %v528_v43  ;;  %v590_v57 = vsel %vm582_vm5, %v581_v60, %v555_v34  ;;  %vm597_vm15 = vcmp.ge.s32.totalorder %v2261_v33, %v1757_v37  ;;  %v976_v33 = vpop.permute.xlu1 %975 }
  0xc9   :  { %v587_v3 = vsel %vm582_vm5, %v578_v24, %v552_v26  ;;  %v2104_v14 = vsel %vm2027_vm14, %v590_v57, 0.0  ;;  %v554_v30 = vrot.slane %v490_v19, 5 }
  0xca   :  { %v2099_v12 = vsel %vm2014_vm13, %v587_v3, 0.0  ;;  %1533 = vmatprep.subr.msk.mxu1 %vm624_vm7, %v2104_v14  ;;  %1528 = vmatmul.mubr.msk.f32.gmra.mxu1 %vm617_vm10, %v48_v22 }
  0xcb   :  { %1530 = vmatpush1.msk.msra.mxu0 %vm624_vm7, %v2099_v12  ;;  %v589_v25 = vsel %vm582_vm5, %v580_v42, %v554_v30  ;;  %944 = vmatprep.mubr.f32.mxu1 %v2258_v0 }
  0xcc   :  { %1531 = vmatmul.mubr.msk.f32.vlgmr.msra.gmra.mxu0 %vm617_vm10, %v2037_v4  ;;  %v2122_v27 = vsel %vm597_vm15, %v589_v25, 0.0 }
  0xcd   :  { %873 = vmatprep.mubr.f32.mxu0 %v2258_v0  ;;  %1534 = vmatpush1.msk.msra.mxu1 %vm624_vm7, %v2122_v27 }
  0xce   :  { %1535 = vmatmul.mubr.msk.f32.vlgmr.msra.gmra.mxu1 %vm617_vm10, %v2037_v4 }
  0xcf   :  { %950 = vmatprep.mubr.f32.mxu1 %v2258_v0 }
  0xd0   :  { %1532 = vmatmul.mubr.msk.f32.gmra.mxu0 %vm617_vm10, %v48_v22 }
  0xd1   :  { %1046 = vmatprep.mubr.f32.mxu0 %v2258_v0 }
  0xd2   :  { %1536 = vmatmul.mubr.msk.f32.gmra.mxu1 %vm617_vm10, %v48_v22 }
  0xd3   :  { %1117 = vmatprep.mubr.f32.mxu1 %v2258_v0 }
 0x180   :  { %v715_v61 = vpop.f32.mrf.mxu0 }
 0x181   :  { %v716_v49 = vadd.f32 %v715_v61, %v610_v20 }
 0x182   :  { %v717_v54 = vpop.f32.mrf.mxu0 }
 0x183   :  { %v718_v52 = vadd.f32 %v717_v54, %v610_v20  ;;  %v957_v46 = vmax.f32 %v716_v49, 0.0 }
 0x184   :  { %v721_v15 = vpop.f32.mrf.mxu0 }
 0x185   :  { %v722_v32 = vadd.f32 %v721_v15, %v615_v29  ;;  %v958_v13 = vmax.f32 %v718_v52, 0.0 }
 0x186   :  { %v792_v40 = vpop.f32.mrf.mxu1  ;;  %v723_v35 = vpop.f32.mrf.mxu0 }
 0x187   :  { %v724_v50 = vadd.f32 %v723_v35, %v615_v29  ;;  %v965_v4 = vmax.f32 %v722_v32, 0.0  ;;  %v793_v22 = vadd.f32 %v792_v40, %v610_v20 }
 0x188   :  { %v794_v47 = vpop.f32.mrf.mxu1 }
 0x189   :  { %v966_v56 = vmax.f32 %v724_v50, 0.0  ;;  %v795_v45 = vadd.f32 %v794_v47, %v610_v20  ;;  %v959_v26 = vmax.f32 %v793_v22, 0.0 }
 0x18a   :  { %v798_v59 = vpop.f32.mrf.mxu1 }
 0x18b   :  { %v799_v36 = vadd.f32 %v798_v59, %v615_v29  ;;  %1010 = vmatprep.subr.mxu0 %v966_v56  ;;  %v960_v21 = vmax.f32 %v795_v45, 0.0 }
 0x18c   :  { %v869_v2 = vpop.f32.mrf.mxu0  ;;  %v800_v51 = vpop.f32.mrf.mxu1  ;;  %1011 = vmatpush1.msra.mxu0 %v965_v4 }
 0x18d   :  { %v801_v44 = vadd.f32 %v800_v51, %v615_v29  ;;  %v967_v23 = vmax.f32 %v799_v36, 0.0  ;;  %1012 = vmatprep.subr.mxu0 %v958_v13  ;;  %v870_v17 = vadd.f32 %v869_v2, %v610_v20 }
 0x18e   :  { %v871_v7 = vpop.f32.mrf.mxu0  ;;  %v946_v39 = vpop.f32.mrf.mxu1  ;;  %1013 = vmatpush1.msra.mxu0 %v957_v46 }
 0x18f   :  { %v968_v55 = vmax.f32 %v801_v44, 0.0  ;;  %v872_v43 = vadd.f32 %v871_v7, %v610_v20  ;;  %1537 = vmatmul.mubr.msk.f32.vlgmr.msra.gmra.mxu0 %vm978_vm0, %v51_v9  ;;  %v961_v60 = vmax.f32 %v870_v17, 0.0  ;;  %v947_v57 = vadd.f32 %v946_v39, %v610_v20 }
 0x190   :  { %v875_v1 = vpop.f32.mrf.mxu0  ;;  %v948_v31 = vpop.f32.mrf.mxu1  ;;  %1188 = vmatprep.mubr.f32.mxu0 %v2258_v0 }
 0x191   :  { %v876_v53 = vadd.f32 %v875_v1, %v615_v29  ;;  %1081 = vmatprep.subr.mxu1 %v968_v55  ;;  %v962_v5 = vmax.f32 %v872_v43, 0.0  ;;  %v949_v3 = vadd.f32 %v948_v31, %v610_v20  ;;  %v963_v28 = vmax.f32 %v947_v57, 0.0 }
 0x192   :  { %v877_v62 = vpop.f32.mrf.mxu0  ;;  %1082 = vmatpush1.msra.mxu1 %v967_v23  ;;  %v952_v41 = vpop.f32.mrf.mxu1 }
 0x193   :  { %v878_v18 = vadd.f32 %v877_v62, %v615_v29  ;;  %1083 = vmatprep.subr.mxu1 %v960_v21  ;;  %v969_v34 = vmax.f32 %v876_v53, 0.0  ;;  %v953_v24 = vadd.f32 %v952_v41, %v615_v29  ;;  %v964_v10 = vmax.f32 %v949_v3, 0.0 }
 0x194   :  { %1084 = vmatpush1.msra.mxu1 %v959_v26  ;;  %v954_v63 = vpop.f32.mrf.mxu1 }
 0x195   :  { %v970_v11 = vmax.f32 %v878_v18, 0.0  ;;  %1538 = vmatmul.mubr.msk.f32.vlgmr.msra.gmra.mxu1 %vm978_vm0, %v51_v9  ;;  %v955_v38 = vadd.f32 %v954_v63, %v615_v29  ;;  %v971_v30 = vmax.f32 %v953_v24, 0.0 }
 0x196   :  { %1259 = vmatprep.mubr.f32.mxu1 %v2258_v0 }
 0x197   :  { %1152 = vmatprep.subr.mxu0 %v970_v11  ;;  %v972_v19 = vmax.f32 %v955_v38, 0.0 }
 0x198   :  { %1153 = vmatpush1.msra.mxu0 %v969_v34 }
 0x199   :  { %1154 = vmatprep.subr.mxu0 %v962_v5  ;;  %1223 = vmatprep.subr.mxu1 %v972_v19 }
 0x19a   :  { %1155 = vmatpush1.msra.mxu0 %v961_v60  ;;  %1224 = vmatpush1.msra.mxu1 %v971_v30 }
 0x19b   :  { %1539 = vmatmul.mubr.msk.f32.vlgmr.msra.gmra.mxu0 %vm978_vm0, %v51_v9  ;;  %1225 = vmatprep.subr.mxu1 %v964_v10 }
 0x19c   :  { %1226 = vmatpush1.msra.mxu1 %v963_v28 }
 0x19d   :  { %1540 = vmatmul.mubr.msk.f32.vlgmr.msra.gmra.mxu1 %vm978_vm0, %v51_v9 }
 0x24f   :  { %v1048_v42 = vpop.f32.mrf.mxu0 }
 0x250   :  { %v1049_v25 = vadd.f32 %v1048_v42, %v976_v33 }
 0x251   :  { %v1050_v61 = vpop.f32.mrf.mxu0 }
 0x252   :  { %v1266_v54 = vadd.f32 %v1049_v25, %v2045_v8  ;;  %v1051_v0 = vadd.f32 %v1050_v61, %v976_v33 }
 0x254   :  { %v1274_v29 = vsel %vm624_vm7, %v1266_v54, -inf  ;;  %v1267_v20 = vadd.f32 %v1051_v0, %v1981_v16 }
 0x255   :  { %v1119_v15 = vpop.f32.mrf.mxu1  ;;  %v1275_v40 = vrot.slane %v1274_v29, 4 }
 0x256   :  { %v1120_v32 = vadd.f32 %v1119_v15, %v976_v33  ;;  %v1281_v35 = vsel %vm624_vm7, %v1267_v20, -inf }
 0x257   :  { %v1121_v47 = vpop.f32.mrf.mxu1  ;;  %v1276_v50 = vmax.f32 %v1274_v29, %v1275_v40  ;;  %v1282_v2 = vrot.slane %v1281_v35, 4 }
 0x258   :  { %v2147_v52 = vadd.f32 %v1120_v32, %v2069_v58  ;;  %v1122_v4 = vadd.f32 %v1121_v47, %v976_v33 }
 0x259   :  { %v1277_v8 = vrot.slane %v1276_v50, 2  ;;  %v1283_v36 = vmax.f32 %v1281_v35, %v1282_v2 }
 0x25a   :  { %v1288_v56 = vsel %vm624_vm7, %v2147_v52, -inf  ;;  %v1269_v16 = vadd.f32 %v1122_v4, %v2020_v48 }
 0x25b   :  { %v1190_v49 = vpop.f32.mrf.mxu0  ;;  %v1289_v51 = vrot.slane %v1288_v56, 4  ;;  %v1278_v45 = vmax.f32 %v1276_v50, %v1277_v8  ;;  %v1284_v58 = vrot.slane %v1283_v36, 2 }
 0x25c   :  { %v1191_v59 = vadd.f32 %v1190_v49, %v976_v33  ;;  %v1295_v46 = vsel %vm624_vm7, %v1269_v16, -inf }
 0x25d   :  { %v1192_v7 = vpop.f32.mrf.mxu0  ;;  %v1290_v9 = vmax.f32 %v1288_v56, %v1289_v51  ;;  %v1296_v1 = vrot.slane %v1295_v46, 4  ;;  %v1261_v23 = vpop.f32.mrf.mxu1  ;;  %v1279_v48 = vrot.slane %v1278_v45, 1  ;;  %v1285_v55 = vmax.f32 %v1283_v36, %v1284_v58 }
 0x25e   :  { %v2153_v13 = vadd.f32 %v1191_v59, %v2099_v12  ;;  %v1193_v44 = vadd.f32 %v1192_v7, %v976_v33  ;;  %v1262_v62 = vadd.f32 %v1261_v23, %v976_v33 }
 0x25f   :  { %v1291_v12 = vrot.slane %v1290_v9, 2  ;;  %v1297_v43 = vmax.f32 %v1295_v46, %v1296_v1  ;;  %v1263_v18 = vpop.f32.mrf.mxu1  ;;  %v1280_v17 = vmax.f32 %v1278_v45, %v1279_v48  ;;  %v1286_v21 = vrot.slane %v1285_v55, 1 }
 0x260   :  { %v1302_v39 = vsel %vm624_vm7, %v2153_v13, -inf  ;;  %v2159_v22 = vadd.f32 %v1193_v44, %v2073_v6  ;;  %v1272_v41 = vadd.f32 %v1262_v62, %v2122_v27  ;;  %v1264_v6 = vadd.f32 %v1263_v18, %v976_v33 }
 0x261   :  { %v1303_v53 = vrot.slane %v1302_v39, 4  ;;  %v1292_v11 = vmax.f32 %v1290_v9, %v1291_v12  ;;  %v1298_v34 = vrot.slane %v1297_v43, 2  ;;  %v1330_v24 = vsub.f32 %v1266_v54, %v1280_v17 }
 0x262   :  { %v1309_v31 = vsel %vm624_vm7, %v2159_v22, -inf  ;;  %v1287_v63 = vmax.f32 %v1285_v55, %v1286_v21  ;;  %v1316_v3 = vsel %vm624_vm7, %v1272_v41, -inf  ;;  %v1273_v25 = vadd.f32 %v1264_v6, %v2104_v14 }
 0x263   :  { %v1304_v26 = vmax.f32 %v1302_v39, %v1303_v53  ;;  %v1310_v5 = vrot.slane %v1309_v31, 4  ;;  %v1293_v38 = vrot.slane %v1292_v11, 1  ;;  %v1299_v57 = vmax.f32 %v1297_v43, %v1298_v34 }
 0x264   :  { %v1317_v19 = vrot.slane %v1316_v3, 4  ;;  %v1338_v10 = vmul.f32 1.442695, %v1330_v24  ;;  %v1331_v28 = vsub.f32 %v1267_v20, %v1287_v63  ;;  %v1323_v15 = vsel %vm624_vm7, %v1273_v25, -inf }
 0x265   :  { %v1305_v60 = vrot.slane %v1304_v26, 2  ;;  %v1311_v30 = vmax.f32 %v1309_v31, %v1310_v5  ;;  %v1294_v61 = vmax.f32 %v1292_v11, %v1293_v38  ;;  %v1300_v27 = vrot.slane %v1299_v57, 1 }
 0x266   :  { %v1318_v0 = vmax.f32 %v1316_v3, %v1317_v19  ;;  %1609 = vpow2.f32 %v1338_v10  ;;  %v1340_v33 = vmul.f32 1.442695, %v1331_v28  ;;  %v1324_v20 = vrot.slane %v1323_v15, 4 }
 0x267   :  { %v1306_v42 = vmax.f32 %v1304_v26, %v1305_v60  ;;  %v1312_v29 = vrot.slane %v1311_v30, 2  ;;  %v1332_v40 = vsub.f32 %v2147_v52, %v1294_v61  ;;  %v1301_v32 = vmax.f32 %v1299_v57, %v1300_v27 }
 0x268   :  { %v1319_v35 = vrot.slane %v1318_v0, 2  ;;  %1611 = vpow2.f32 %v1340_v33  ;;  %v1325_v59 = vmax.f32 %v1323_v15, %v1324_v20 }
 0x269   :  { %v1307_v54 = vrot.slane %v1306_v42, 1  ;;  %v1313_v47 = vmax.f32 %v1311_v30, %v1312_v29  ;;  %v1342_v2 = vmul.f32 1.442695, %v1332_v40  ;;  %v1333_v4 = vsub.f32 %v1269_v16, %v1301_v32 }
 0x26a   :  { %v1320_v14 = vmax.f32 %v1318_v0, %v1319_v35  ;;  %v1326_v51 = vrot.slane %v1325_v59, 2  ;;  %v2171_v16 = vcvt.s32.f32 %v1757_v37 }
 0x26b   :  { %v1308_v50 = vmax.f32 %v1306_v42, %v1307_v54  ;;  %v1314_v49 = vrot.slane %v1313_v47, 1  ;;  %1613 = vpow2.f32 %v1342_v2  ;;  %v1344_v8 = vmul.f32 1.442695, %v1333_v4 }
 0x26c   :  { %v1321_v36 = vrot.slane %v1320_v14, 1  ;;  %v1327_v44 = vmax.f32 %v1325_v59, %v1326_v51 }
 0x26d   :  { %v1334_v56 = vsub.f32 %v2153_v13, %v1308_v50  ;;  %v1315_v7 = vmax.f32 %v1313_v47, %v1314_v49  ;;  %1615 = vpow2.f32 %v1344_v8 }
 0x26e   :  { %v1322_v52 = vmax.f32 %v1320_v14, %v1321_v36  ;;  %v1328_v9 = vrot.slane %v1327_v44, 1 }
 0x26f   :  { %v1346_v45 = vmul.f32 1.442695, %v1334_v56  ;;  %v1335_v46 = vsub.f32 %v2159_v22, %v1315_v7 }
 0x270   :  { %v1336_v58 = vsub.f32 %v1272_v41, %v1322_v52  ;;  %v1329_v39 = vmax.f32 %v1327_v44, %v1328_v9 }
 0x271   :  { %1617 = vpow2.f32 %v1346_v45  ;;  %v1348_v48 = vmul.f32 1.442695, %v1335_v46 }
 0x272   :  { %v1350_v1 = vmul.f32 1.442695, %v1336_v58  ;;  %v1337_v55 = vsub.f32 %v1273_v25, %v1329_v39 }
 0x273   :  { %v1610_v23 = vpop.eup %1609 }
 0x274   :  { %v1354_v13 = vsel %vm624_vm7, %v1610_v23, 0.0  ;;  %v1410_v12 = vmul.f32 %v1610_v23, %v2171_v16  ;;  %1619 = vpow2.f32 %v1350_v1  ;;  %v1352_v31 = vmul.f32 1.442695, %v1337_v55 }
 0x275   :  { %v1612_v53 = vpop.eup %1611  ;;  %v1355_v62 = vrot.slane %v1354_v13, 4  ;;  %1621 = vpow2.f32 %v1348_v48 }
 0x276   :  { %v1361_v43 = vsel %vm624_vm7, %v1612_v53, 0.0  ;;  %v1418_v21 = vsel %vm624_vm7, %v1410_v12, 0.0  ;;  %1623 = vpow2.f32 %v1352_v31  ;;  %v1411_v5 = vmul.f32 %v1612_v53, %v2171_v16 }
 0x277   :  { %v1356_v17 = vadd.f32 %v1355_v62, %v1354_v13  ;;  %v1362_v26 = vrot.slane %v1361_v43, 4  ;;  %v1419_v34 = vrot.slane %v1418_v21, 4 }
 0x278   :  { %v1614_v22 = vpop.eup %1613  ;;  %v1425_v19 = vsel %vm624_vm7, %v1411_v5, 0.0 }
 0x279   :  { %v1368_v41 = vsel %vm624_vm7, %v1614_v22, 0.0  ;;  %v1357_v6 = vrot.slane %v1356_v17, 2  ;;  %v1363_v63 = vadd.f32 %v1362_v26, %v1361_v43  ;;  %v1412_v38 = vmul.f32 %v1614_v22, %v2171_v16 }
 0x27a   :  { %v1616_v18 = vpop.eup %1615  ;;  %v1369_v24 = vrot.slane %v1368_v41, 4  ;;  %v2181_v57 = vadd.f32 %v1419_v34, %v1418_v21  ;;  %v1426_v0 = vrot.slane %v1425_v19, 4 }
 0x27b   :  { %v1375_v11 = vsel %vm624_vm7, %v1616_v18, 0.0  ;;  %v1358_v30 = vadd.f32 %v1357_v6, %v1356_v17  ;;  %v1364_v28 = vrot.slane %v1363_v63, 2  ;;  %v2186_v27 = vsel %vm624_vm7, %v1412_v38, 0.0 }
 0x27c   :  { %v1376_v60 = vrot.slane %v1375_v11, 4  ;;  %v1370_v10 = vadd.f32 %v1369_v24, %v1368_v41  ;;  %v1421_v33 = vrot.slane %v2181_v57, 2  ;;  %v1433_v50 = vrot.slane %v2186_v27, 4 }
 0x27d   :  { %v1359_v40 = vrot.slane %v1358_v30, 1  ;;  %v1365_v35 = vadd.f32 %v1364_v28, %v1363_v63  ;;  %v2192_v14 = vadd.f32 %v1426_v0, %v1425_v19  ;;  %v1413_v49 = vmul.f32 %v1616_v18, %v2171_v16 }
 0x27e   :  { %v1618_v3 = vpop.eup %1617  ;;  %v1377_v25 = vadd.f32 %v1376_v60, %v1375_v11  ;;  %v1371_v32 = vrot.slane %v1370_v10, 2 }
 0x27f   :  { %v1382_v61 = vsel %vm624_vm7, %v1618_v3, 0.0  ;;  %v1414_v15 = vmul.f32 %v1618_v3, %v2171_v16  ;;  %v1360_v44 = vadd.f32 %v1359_v40, %v1358_v30  ;;  %v1366_v58 = vrot.slane %v1365_v35, 1 }
 0x280   :  { %v1383_v54 = vrot.slane %v1382_v61, 4  ;;  %v1378_v20 = vrot.slane %v1377_v25, 2  ;;  %v1372_v45 = vadd.f32 %v1371_v32, %v1370_v10  ;;  %v1439_v13 = vsel %vm624_vm7, %v1413_v49, 0.0 }
 0x281   :  { %v1620_v42 = vpop.eup %1619  ;;  %v1446_v7 = vsel %vm624_vm7, %v1414_v15, 0.0  ;;  %v1367_v26 = vadd.f32 %v1366_v58, %v1365_v35  ;;  %1625 = vrcp.f32 %v1360_v44  ;;  %v1440_v60 = vrot.slane %v1439_v13, 4 }
 0x282   :  { %v1622_v29 = vpop.eup %1621  ;;  %v1396_v47 = vsel %vm624_vm7, %v1620_v42, 0.0  ;;  %v1384_v2 = vadd.f32 %v1383_v54, %v1382_v61  ;;  %v1416_v52 = vmul.f32 %v1620_v42, %v2171_v16  ;;  %v1379_v9 = vadd.f32 %v1378_v20, %v1377_v25 }
 0x283   :  { %v1397_v4 = vrot.slane %v1396_v47, 4  ;;  %v1389_v59 = vsel %vm624_vm7, %v1622_v29, 0.0  ;;  %v1415_v8 = vmul.f32 %v1622_v29, %v2171_v16  ;;  %v1624_v56 = vpop.eup %1623  ;;  %v1447_v48 = vrot.slane %v1446_v7, 4 }
 0x284   :  { %v1385_v36 = vrot.slane %v1384_v2, 2  ;;  %v1390_v46 = vrot.slane %v1389_v59, 4  ;;  %v1403_v53 = vsel %vm624_vm7, %v1624_v56, 0.0  ;;  %v1460_v43 = vsel %vm624_vm7, %v1416_v52, 0.0 }
 0x285   :  { %v1398_v51 = vadd.f32 %v1397_v4, %v1396_v47  ;;  %v1453_v23 = vsel %vm624_vm7, %v1415_v8, 0.0  ;;  %v1404_v22 = vrot.slane %v1403_v53, 4  ;;  %v1373_v31 = vrot.slane %v1372_v45, 1 }
 0x286   :  { %v1386_v1 = vadd.f32 %v1385_v36, %v1384_v2  ;;  %v1391_v55 = vadd.f32 %v1390_v46, %v1389_v59  ;;  %v1454_v17 = vrot.slane %v1453_v23, 4  ;;  %v1417_v21 = vmul.f32 %v1624_v56, %v2171_v16 }
 0x287   :  { %v1399_v39 = vrot.slane %v1398_v51, 2  ;;  %v1380_v41 = vrot.slane %v1379_v9, 1  ;;  %v1448_v5 = vadd.f32 %v1447_v48, %v1446_v7  ;;  %v1461_v6 = vrot.slane %v1460_v43, 4 }
 0x288   :  { %v1387_v62 = vrot.slane %v1386_v1, 1  ;;  %v1392_v18 = vrot.slane %v1391_v55, 2  ;;  %v1405_v63 = vadd.f32 %v1404_v22, %v1403_v53  ;;  %v1467_v38 = vsel %vm624_vm7, %v1417_v21, 0.0 }
 0x289   :  { %v1400_v12 = vadd.f32 %v1399_v39, %v1398_v51  ;;  %v1455_v30 = vadd.f32 %v1454_v17, %v1453_v23  ;;  %v1374_v28 = vadd.f32 %v1373_v31, %v1372_v45  ;;  %v1381_v16 = vadd.f32 %v1380_v41, %v1379_v9 }
 0x28a   :  { %v1388_v11 = vadd.f32 %v1387_v62, %v1386_v1  ;;  %v1393_v24 = vadd.f32 %v1392_v18, %v1391_v55  ;;  %v1406_v10 = vrot.slane %v1405_v63, 2  ;;  %v1468_v42 = vrot.slane %v1467_v38, 4 }
 0x28b   :  { %v1401_v34 = vrot.slane %v1400_v12, 1  ;;  %v1449_v25 = vrot.slane %v1448_v5, 2  ;;  %v1462_v61 = vadd.f32 %v1461_v6, %v1460_v43  ;;  %v1434_v54 = vadd.f32 %v1433_v50, %v2186_v27 }
 0x28c   :  { %1627 = vrcp.f32 %v1388_v11  ;;  %v1394_v19 = vrot.slane %v1393_v24, 1  ;;  %v1407_v29 = vadd.f32 %v1406_v10, %v1405_v63  ;;  %v1428_v15 = vrot.slane %v2192_v14, 2 }
 0x28d   :  { %v1402_v3 = vadd.f32 %v1401_v34, %v1400_v12  ;;  %1629 = vrcp.f32 %v1367_v26  ;;  %v1441_v40 = vadd.f32 %v1440_v60, %v1439_v13  ;;  %v1456_v32 = vrot.slane %v1455_v30, 2 }
 0x28e   :  { %v1395_v0 = vadd.f32 %v1394_v19, %v1393_v24  ;;  %v1408_v35 = vrot.slane %v1407_v29, 1  ;;  %v1469_v47 = vadd.f32 %v1468_v42, %v1467_v38  ;;  %v1450_v20 = vadd.f32 %v1449_v25, %v1448_v5  ;;  %v1626_v45 = vpop.eup %1625 }
 0x28f   :  { %1631 = vrcp.f32 %v1402_v3  ;;  %v1463_v2 = vrot.slane %v1462_v61, 2  ;;  %v1422_v49 = vadd.f32 %v1421_v33, %v2181_v57  ;;  %v1435_v59 = vrot.slane %v1434_v54, 2 }
 0x290   :  { %1633 = vrcp.f32 %v1395_v0  ;;  %v1409_v4 = vadd.f32 %v1408_v35, %v1407_v29  ;;  %v1442_v8 = vrot.slane %v1441_v40, 2  ;;  %v1429_v27 = vadd.f32 %v1428_v15, %v2192_v14 }
 0x291   :  { %1635 = vrcp.f32 %v1374_v28  ;;  %v1457_v50 = vadd.f32 %v1456_v32, %v1455_v30  ;;  %v1470_v56 = vrot.slane %v1469_v47, 2  ;;  %v1451_v36 = vrot.slane %v1450_v20, 1 }
 0x292   :  { %1637 = vrcp.f32 %v1381_v16  ;;  %v1464_v7 = vadd.f32 %v1463_v2, %v1462_v61  ;;  %v1423_v51 = vrot.slane %v1422_v49, 1  ;;  %v1436_v52 = vadd.f32 %v1435_v59, %v1434_v54 }
 0x293   :  { %1639 = vrcp.f32 %v1409_v4  ;;  %v1443_v44 = vadd.f32 %v1442_v8, %v1441_v40  ;;  %v1430_v58 = vrot.slane %v1429_v27, 1  ;;  %v1458_v46 = vrot.slane %v1457_v50, 1 }
 0x294   :  { %v1471_v9 = vadd.f32 %v1470_v56, %v1469_v47  ;;  %v1646_v39 = vmov 1983009808   ;;  %v1452_v33 = vadd.f32 %v1451_v36, %v1450_v20  ;;  %v1465_v13 = vrot.slane %v1464_v7, 1 }
 0x295   :  { %v1501_v23 = vunpack.c.l.s4 %v1646_v39  ;;  %v1424_v48 = vadd.f32 %v1423_v51, %v1422_v49  ;;  %v1437_v14 = vrot.slane %v1436_v52, 1  ;;  %v1444_v55 = vrot.slane %v1443_v44, 1 }
 0x296   :  { %v1431_v62 = vadd.f32 %v1430_v58, %v1429_v27  ;;  %v1459_v43 = vadd.f32 %v1458_v46, %v1457_v50  ;;  %v1472_v22 = vrot.slane %v1471_v9, 1  ;;  %v1466_v41 = vadd.f32 %v1465_v13, %v1464_v7 }
 0x297   :  { %v1502_v18 = vunpack.c.0.s8 %v1501_v23  ;;  %v1482_v21 = vmul.f32 %v1626_v45, %v1424_v48  ;;  %v1438_v5 = vadd.f32 %v1437_v14, %v1436_v52  ;;  %v1445_v6 = vadd.f32 %v1444_v55, %v1443_v44 }
 0x298   :  { %v1473_v3 = vadd.f32 %v1472_v22, %v1471_v9 }
 0x299   :  { %v1628_v1 = vpop.eup %1627  ;;  %v1505_v30 = vsub.s32 %v1502_v18, %v1757_v37 }
 0x29a   :  { %v1630_v57 = vpop.eup %1629  ;;  %v1486_v12 = vmul.f32 %v1628_v1, %v1452_v33 }
 0x29b   :  { %v1483_v26 = vmul.f32 %v1630_v57, %v1431_v62 }
 0x29c   :  { %v1632_v53 = vpop.eup %1631  ;;  %v1490_v24 = vsel %vm564_vm3, %v1482_v21, %v1486_v12 }
 0x29d   :  { %v1634_v31 = vpop.eup %1633  ;;  %v1488_v63 = vmul.f32 %v1632_v53, %v1466_v41 }
 0x29e   :  { %v1636_v17 = vpop.eup %1635  ;;  %v1487_v11 = vmul.f32 %v1634_v31, %v1459_v43 }
 0x29f   :  { %v1638_v34 = vpop.eup %1637  ;;  %v1484_v10 = vmul.f32 %v1636_v17, %v1438_v5 }
 0x2a0   :  { %v1491_v60 = vsel %vm564_vm3, %v1483_v26, %v1487_v11  ;;  %v1640_v38 = vpop.eup %1639  ;;  %v1485_v28 = vmul.f32 %v1638_v34, %v1445_v6 }
 0x2a1   :  { %v1498_v19 = vcombine.low %v1490_v24, %v1491_v60  ;;  %v1489_v16 = vmul.f32 %v1640_v38, %v1473_v3  ;;  %v1492_v42 = vsel %vm564_vm3, %v1484_v10, %v1488_v63 }
 0x2a3   :  { %v1493_v25 = vsel %vm564_vm3, %v1485_v28, %v1489_v16  ;;  %v1506_v61 = vrot.slane %v1498_v19, %v1505_v30 }
 0x2a4   :  { %v1499_v0 = vcombine.low %v1492_v42, %v1493_v25 }
 0x2a6   :  { %v1513_v29 = vrot.slane %v1499_v0, %v1505_v30 }
 0x2a8   :  { %v1514_v54 = vcombine.low %v1506_v61, %v1513_v29 }
 0x2aa   :  { %1516 = vst [vmem:[%s2225_s6] sm:$0xff] %v1514_v54 }

</bundles_post_ra>
